<compile_context>
chip_gen: v7x
topology: tpu7x:2x2x1
jax: 0.10.0
libtpu: 0.0.40
codegen_flags: <defaults>
</compile_context>

<pallas_src>
import functools

import jax
import jax.numpy as jnp
from jax.experimental import pallas as pl
from jax.experimental.pallas import tpu as pltpu


# Set to jnp.bfloat16 on v6e/v7x for ~2x MXU throughput and half the HBM/VMEM traffic
# (accumulation stays f32). Kept f32 here for bit-fidelity with the PyTorch reference.
MXU_DTYPE = jnp.float32


# ------------------------------ tiling helpers ------------------------------ #

def _pick_tile(dim, target, align):
    """Largest tile <= target that divides dim and is a multiple of `align`;
    falls back to the full dim (always a legal block)."""
    if dim <= target:
        return dim
    t = (target // align) * align
    while t >= align:
        if dim % t == 0:
            return t
        t -= align
    return dim


def _attn_heads_per_block(nH, d, H):
    """Pack heads so the attention output block is lane-dense (>=128 lanes) when possible."""
    hpb = min(nH, max(1, 128 // max(d, 1)))
    while hpb > 1 and nH % hpb != 0:
        hpb -= 1
    if (hpb * d) % 128 != 0 and hpb * d != H:
        hpb = nH  # full-H column block is always a legal lane width
    return hpb


# ----------------------------- Pallas kernels ------------------------------ #

def _linear_kernel(x_ref, w_ref, b_ref, o_ref, acc_ref, *, activation):
    @pl.when(pl.program_id(2) == 0)
    def _():
        acc_ref[...] = jnp.zeros_like(acc_ref)

    acc_ref[...] += jnp.dot(x_ref[...].astype(MXU_DTYPE),
                            w_ref[...].astype(MXU_DTYPE),
                            preferred_element_type=jnp.float32)

    @pl.when(pl.program_id(2) == pl.num_programs(2) - 1)
    def _():
        y = acc_ref[...] + b_ref[...]
        if activation == "gelu":
            # TODO(synk): BERT uses exact erf-GELU; tanh approximation used for robust lowering.
            y = jax.nn.gelu(y, approximate=True)
        o_ref[...] = y.astype(o_ref.dtype)


def pallas_linear(x, w, b, activation=None):
    M, K = x.shape
    N = w.shape[1]
    tm = _pick_tile(M, 256, 8)
    tn = _pick_tile(N, 512, 128)   # TODO(synk): real-vocab decoder wants V padded to 128 for clean N-tiling.
    tk = _pick_tile(K, 512, 128)
    grid = (M // tm, N // tn, K // tk)
    return pl.pallas_call(
        functools.partial(_linear_kernel, activation=activation),
        out_shape=jax.ShapeDtypeStruct((M, N), x.dtype),
        grid=grid,
        in_specs=[pl.BlockSpec((tm, tk), lambda i, j, k: (i, k)),
                  pl.BlockSpec((tk, tn), lambda i, j, k: (k, j)),
                  pl.BlockSpec((1, tn), lambda i, j, k: (0, j))],
        out_specs=pl.BlockSpec((tm, tn), lambda i, j, k: (i, j)),
        scratch_shapes=[pltpu.VMEM((tm, tn), jnp.float32)],
        compiler_params=pltpu.CompilerParams(
            dimension_semantics=("parallel", "parallel", "arbitrary")),
    )(x, w, b.reshape(1, N))


def _layernorm_kernel(*refs, eps, has_residual):
    if has_residual:
        x_ref, r_ref, g_ref, b_ref, o_ref = refs
        x = x_ref[...].astype(jnp.float32) + r_ref[...].astype(jnp.float32)
    else:
        x_ref, g_ref, b_ref, o_ref = refs
        x = x_ref[...].astype(jnp.float32)
    mu = jnp.mean(x, axis=-1, keepdims=True)
    var = jnp.mean((x - mu) ** 2, axis=-1, keepdims=True)
    y = (x - mu) * jax.lax.rsqrt(var + eps)
    o_ref[...] = (y * g_ref[...] + b_ref[...]).astype(o_ref.dtype)


def pallas_layernorm(x, gamma, beta, residual=None, eps=1e-12):
    M, H = x.shape
    tm = _pick_tile(M, 512, 8)
    row_spec = pl.BlockSpec((tm, H), lambda i: (i, 0))
    vec_spec = pl.BlockSpec((1, H), lambda i: (0, 0))
    if residual is None:
        in_specs = [row_spec, vec_spec, vec_spec]
        args = (x, gamma.reshape(1, H), beta.reshape(1, H))
    else:
        in_specs = [row_spec, row_spec, vec_spec, vec_spec]
        args = (x, residual, gamma.reshape(1, H), beta.reshape(1, H))
    return pl.pallas_call(
        functools.partial(_layernorm_kernel, eps=eps, has_residual=residual is not None),
        out_shape=jax.ShapeDtypeStruct((M, H), x.dtype),
        grid=(M // tm,),
        in_specs=in_specs,
        out_specs=row_spec,
        compiler_params=pltpu.CompilerParams(dimension_semantics=("parallel",)),
    )(*args)


def _attention_kernel(q_ref, k_ref, v_ref, m_ref, o_ref, *, scale, hpb, d):
    # q_ref/k_ref/v_ref: (L, hpb*d) column slices of the per-batch projections.
    # m_ref: (1, L) additive key mask for this batch.
    m = m_ref[...].astype(jnp.float32)
    outs = []
    for hh in range(hpb):                     # static loop; hpb is 1-2 typically
        lo, hi = hh * d, (hh + 1) * d
        q = q_ref[:, lo:hi].astype(jnp.float32) * scale   # fold 1/sqrt(d) into q (L,d), not scores (L,L)
        k = k_ref[:, lo:hi].astype(jnp.float32)
        v = v_ref[:, lo:hi].astype(jnp.float32)
        # contract last dims (no explicit transpose of k)
        s = jax.lax.dot_general(q, k, (((1,), (1,)), ((), ())),
                                preferred_element_type=jnp.float32)
        s = s + m
        s = s - jnp.max(s, axis=-1, keepdims=True)
        p = jnp.exp(s)
        p = p * pl.reciprocal(jnp.sum(p, axis=-1, keepdims=True), approx=True)
        outs.append(jnp.dot(p, v, preferred_element_type=jnp.float32))
    ctx = outs[0] if hpb == 1 else jnp.concatenate(outs, axis=-1)
    o_ref[...] = ctx.astype(o_ref.dtype)      # single lane-dense block store


def pallas_attention(q, k, v, ext_mask, B, L, nH, d):
    # q, k, v: (B*L, H) projections (head h lives in columns [h*d, (h+1)*d));
    # ext_mask: (B, 1, L) additive (0 / -10000).
    # TODO(synk): for L >= 1024 switch to a flash-style K-tiled online softmax.
    H = nH * d
    hpb = _attn_heads_per_block(nH, d, H)
    ng = nH // hpb
    scale = 1.0 / float(d) ** 0.5
    return pl.pallas_call(
        functools.partial(_attention_kernel, scale=scale, hpb=hpb, d=d),
        out_shape=jax.ShapeDtypeStruct((B * L, H), q.dtype),
        grid=(B, ng),
        in_specs=[pl.BlockSpec((L, hpb * d), lambda b, g: (b, g)),
                  pl.BlockSpec((L, hpb * d), lambda b, g: (b, g)),
                  pl.BlockSpec((L, hpb * d), lambda b, g: (b, g)),
                  pl.BlockSpec((None, 1, L), lambda b, g: (b, 0, 0))],
        out_specs=pl.BlockSpec((L, hpb * d), lambda b, g: (b, g)),
        compiler_params=pltpu.CompilerParams(
            dimension_semantics=("parallel", "parallel")),
    )(q, k, v, ext_mask)


# ------------------------------ BERT forward ------------------------------- #

def bert_layer(x, p, ext_mask, B, L, nH):
    M, H = x.shape
    d = H // nH

    qkv = pallas_linear(x, p["qkv_w"], p["qkv_b"])          # fused Q/K/V: (M, 3H)
    q, k, v = qkv[:, :H], qkv[:, H:2 * H], qkv[:, 2 * H:]

    ctx = pallas_attention(q, k, v, ext_mask, B, L, nH, d)  # (M, H), same column layout as q

    attn_out = pallas_linear(ctx, p["ao_w"], p["ao_b"])
    x = pallas_layernorm(attn_out, p["attn_ln_g"], p["attn_ln_b"], residual=x)

    inter = pallas_linear(x, p["i_w"], p["i_b"], activation="gelu")
    out = pallas_linear(inter, p["o_w"], p["o_b"])
    x = pallas_layernorm(out, p["out_ln_g"], p["out_ln_b"], residual=x)
    return x


def bert_encoder_forward(params, input_ids, attention_mask, token_type_ids,
                         rels_num, nH, return_mask_hidden=True, return_cls_hidden=True):
    B, L = input_ids.shape
    H = params["word_emb"].shape[1]

    emb = (params["word_emb"][input_ids]
           + params["pos_emb"][:L][None, :, :]
           + params["type_emb"][token_type_ids])
    x = pallas_layernorm(emb.reshape(B * L, H), params["emb_ln_g"], params["emb_ln_b"])

    # HuggingFace extended attention mask: (1 - mask) * -10000, broadcast over queries.
    ext_mask = ((1.0 - attention_mask.astype(jnp.float32)) * -10000.0)[:, None, :]

    for p in params["layers"]:
        x = bert_layer(x, p, ext_mask, B, L, nH)

    # torch.where(input_ids == 103): the module asserts exactly one [MASK] per row,
    # so the gather reduces to (arange(B), argmax over each row).
    # TODO(synk): the PyTorch assert (exactly one [MASK]) has no in-graph equivalent; argmax
    # silently picks column 0 if [MASK] is absent.
    y_idxs = jnp.argmax((input_ids == 103).astype(jnp.int32), axis=1)
    rows = jnp.arange(B)
    mask_hidden = x[rows * L + y_idxs]        # hidden_states[-1][x_idxs, y_idxs]  (B, H)
    cls_hidden = x[rows * L]                  # hidden_states[-1][:, 0, :]         (B, H)

    # MLM head (BertOnlyMLMHead) on the gathered [MASK] rows only — only those logits
    # are ever consumed downstream (out.logits[x_idxs, y_idxs]).
    t = pallas_linear(mask_hidden, params["mlm_dense_w"], params["mlm_dense_b"],
                      activation="gelu")
    t = pallas_layernorm(t, params["mlm_ln_g"], params["mlm_ln_b"])
    mask_logits = pallas_linear(t, params["decoder_w"], params["decoder_b"])   # (B, V)
    rel_logits = mask_logits[:, -rels_num:]

    if not return_mask_hidden:
        return rel_logits
    if not return_cls_hidden:
        return rel_logits, mask_hidden
    return rel_logits, mask_hidden, cls_hidden


# ------------------------------- Params init -------------------------------- #

def init_params(key, *, vocab_size, hidden, num_layers, intermediate, max_pos, type_vocab):
    def nrm(k, shape):
        return jax.random.normal(k, shape, jnp.float32) * 0.02

    keys = jax.random.split(key, 8 + num_layers)
    params = {
        "word_emb": nrm(keys[0], (vocab_size, hidden)),
        "pos_emb": nrm(keys[1], (max_pos, hidden)),
        "type_emb": nrm(keys[2], (type_vocab, hidden)),
        "emb_ln_g": jnp.ones((hidden,), jnp.float32),
        "emb_ln_b": jnp.zeros((hidden,), jnp.float32),
        "mlm_dense_w": nrm(keys[3], (hidden, hidden)),
        "mlm_dense_b": jnp.zeros((hidden,), jnp.float32),
        "mlm_ln_g": jnp.ones((hidden,), jnp.float32),
        "mlm_ln_b": jnp.zeros((hidden,), jnp.float32),
        "decoder_b": jnp.zeros((vocab_size,), jnp.float32),
        "layers": [],
    }
    params["decoder_w"] = params["word_emb"].T        # weight tying (BertForMaskedLM)
    for li in range(num_layers):
        lk = jax.random.split(keys[8 + li], 4)
        params["layers"].append({
            # fused QKV weight: columns [0,H)=Q, [H,2H)=K, [2H,3H)=V
            "qkv_w": nrm(lk[0], (hidden, 3 * hidden)),
            "qkv_b": jnp.zeros((3 * hidden,), jnp.float32),
            "ao_w": nrm(lk[1], (hidden, hidden)), "ao_b": jnp.zeros((hidden,), jnp.float32),
            "attn_ln_g": jnp.ones((hidden,), jnp.float32),
            "attn_ln_b": jnp.zeros((hidden,), jnp.float32),
            "i_w": nrm(lk[2], (hidden, intermediate)),
            "i_b": jnp.zeros((intermediate,), jnp.float32),
            "o_w": nrm(lk[3], (intermediate, hidden)),
            "o_b": jnp.zeros((hidden,), jnp.float32),
            "out_ln_g": jnp.ones((hidden,), jnp.float32),
            "out_ln_b": jnp.zeros((hidden,), jnp.float32),
        })
    return params


# ---------------------------------- Main ------------------------------------ #

if __name__ == "__main__":
    B, L = 2, 8
    H, nH, n_layers, inter = 32, 2, 2, 64
    rels_num = 4
    base_vocab = 119
    vocab = base_vocab + 1 + 4 + rels_num             # resize_token_embeddings(V + 1 + 4 + rels_num)

    key = jax.random.PRNGKey(0)
    pkey, ikey = jax.random.split(key)
    params = init_params(pkey, vocab_size=vocab, hidden=H, num_layers=n_layers,
                         intermediate=inter, max_pos=16, type_vocab=2)

    input_ids = jax.random.randint(ikey, (B, L), 1, 100, dtype=jnp.int32)
    # exactly one [MASK] (token id 103) per sequence, as the module's assert requires
    input_ids = input_ids.at[0, 3].set(103).at[1, 5].set(103)
    attention_mask = jnp.ones((B, L), jnp.int32).at[1, L - 1].set(0)
    token_type_ids = jnp.concatenate(
        [jnp.zeros((B, L // 2), jnp.int32), jnp.ones((B, L // 2), jnp.int32)], axis=1)

    fwd = jax.jit(functools.partial(bert_encoder_forward, rels_num=rels_num, nH=nH))
    rel_logits, mask_hidden, cls_hidden = jax.block_until_ready(
        fwd(params, input_ids, attention_mask, token_type_ids))

    assert rel_logits.shape == (B, rels_num)
    assert mask_hidden.shape == (B, H)
    assert cls_hidden.shape == (B, H)
    print("KERNEL_OK")
</pallas_src>

<mosaic_0001>
module attributes {stable_mosaic.version = 11 : i64} {
  func.func @_linear_kernel(%arg0: i32, %arg1: i32, %arg2: i32, %arg3: memref<16x32xf32, #tpu.memory_space<vmem>>, %arg4: memref<32x96xf32, #tpu.memory_space<vmem>>, %arg5: memref<1x96xf32, #tpu.memory_space<vmem>>, %arg6: memref<16x96xf32, #tpu.memory_space<vmem>>, %arg7: memref<16x96xf32, #tpu.memory_space<vmem>>) attributes {dimension_semantics = [#tpu.dimension_semantics<parallel>, #tpu.dimension_semantics<parallel>, #tpu.dimension_semantics<arbitrary>], iteration_bounds = array<i64: 1, 1, 1>, scalar_prefetch = 0 : i64, scratch_operands = 1 : i64, tpu.core_type = #tpu.core_type<tc>, window_params = [{transform_indices = @transform_0, window_bounds = array<i64: 16, 32>}, {transform_indices = @transform_1, window_bounds = array<i64: 32, 96>}, {transform_indices = @transform_2, window_bounds = array<i64: 1, 96>}, {transform_indices = @transform_3, window_bounds = array<i64: 16, 96>}]} {
    %c0_i32 = arith.constant 0 : i32
    %0 = arith.cmpi eq, %arg2, %c0_i32 : i32
    %1 = arith.extui %0 : i1 to i32
    %c0_i32_0 = arith.constant 0 : i32
    %2 = arith.cmpi ne, %1, %c0_i32_0 : i32
    scf.if %2 {
      %cst_10 = arith.constant 0.000000e+00 : f32
      %12 = vector.broadcast %cst_10 : f32 to vector<16x96xf32>
      %c0_11 = arith.constant 0 : index
      %c0_12 = arith.constant 0 : index
      %13 = vector.load %arg7[%c0_11, %c0_12] : memref<16x96xf32, #tpu.memory_space<vmem>>, vector<16x96xf32>
      tpu.vector_store %arg7[%c0_11, %c0_12], %12 {strides = array<i32>} : memref<16x96xf32, #tpu.memory_space<vmem>>, vector<16x96xf32>,
    } else {
    }
    %c0 = arith.constant 0 : index
    %c0_1 = arith.constant 0 : index
    %3 = vector.load %arg7[%c0, %c0_1] : memref<16x96xf32, #tpu.memory_space<vmem>>, vector<16x96xf32>
    %c0_2 = arith.constant 0 : index
    %c0_3 = arith.constant 0 : index
    %4 = vector.load %arg3[%c0_2, %c0_3] : memref<16x32xf32, #tpu.memory_space<vmem>>, vector<16x32xf32>
    %c0_4 = arith.constant 0 : index
    %c0_5 = arith.constant 0 : index
    %5 = vector.load %arg4[%c0_4, %c0_5] : memref<32x96xf32, #tpu.memory_space<vmem>>, vector<32x96xf32>
    %cst = arith.constant dense<0.000000e+00> : vector<16x96xf32>
    %6 = tpu.matmul %4, %5, %cst {dimension_numbers = #tpu.dot_dimension_numbers<[1], [0], [0], [1], [0, 0, 1, 1], [], []>} : vector<16x32xf32>, vector<32x96xf32>, vector<16x96xf32> -> vector<16x96xf32>
    %7 = arith.addf %3, %6 : vector<16x96xf32>
    %c0_6 = arith.constant 0 : index
    %c0_7 = arith.constant 0 : index
    %8 = vector.load %arg7[%c0_6, %c0_7] : memref<16x96xf32, #tpu.memory_space<vmem>>, vector<16x96xf32>
    tpu.vector_store %arg7[%c0_6, %c0_7], %7 {strides = array<i32>} : memref<16x96xf32, #tpu.memory_space<vmem>>, vector<16x96xf32>,
    %c0_i32_8 = arith.constant 0 : i32
    %9 = arith.cmpi eq, %arg2, %c0_i32_8 : i32
    %10 = arith.extui %9 : i1 to i32
    %c0_i32_9 = arith.constant 0 : i32
    %11 = arith.cmpi ne, %10, %c0_i32_9 : i32
    scf.if %11 {
      %c0_10 = arith.constant 0 : index
      %c0_11 = arith.constant 0 : index
      %12 = vector.load %arg7[%c0_10, %c0_11] : memref<16x96xf32, #tpu.memory_space<vmem>>, vector<16x96xf32>
      %c0_12 = arith.constant 0 : index
      %c0_13 = arith.constant 0 : index
      %13 = vector.load %arg5[%c0_12, %c0_13] : memref<1x96xf32, #tpu.memory_space<vmem>>, vector<1x96xf32>
      %14 = vector.broadcast %13 : vector<1x96xf32> to vector<16x96xf32>
      %15 = arith.addf %12, %14 : vector<16x96xf32>
      %c0_14 = arith.constant 0 : index
      %c0_15 = arith.constant 0 : index
      %16 = vector.load %arg6[%c0_14, %c0_15] : memref<16x96xf32, #tpu.memory_space<vmem>>, vector<16x96xf32>
      tpu.vector_store %arg6[%c0_14, %c0_15], %15 {strides = array<i32>} : memref<16x96xf32, #tpu.memory_space<vmem>>, vector<16x96xf32>,
    } else {
    }
    return
  }
  func.func @transform_0(%arg0: i32, %arg1: i32, %arg2: i32) -> (i32, i32) {
    %c0_i32 = arith.constant 0 : i32
    return %arg0, %arg2 : i32, i32
  }
  func.func @transform_1(%arg0: i32, %arg1: i32, %arg2: i32) -> (i32, i32) {
    %c0_i32 = arith.constant 0 : i32
    return %arg2, %arg1 : i32, i32
  }
  func.func @transform_2(%arg0: i32, %arg1: i32, %arg2: i32) -> (i32, i32) {
    %c0_i32 = arith.constant 0 : i32
    %c0_i32_0 = arith.constant 0 : i32
    return %c0_i32, %arg1 : i32, i32
  }
  func.func @transform_3(%arg0: i32, %arg1: i32, %arg2: i32) -> (i32, i32) {
    %c0_i32 = arith.constant 0 : i32
    return %arg0, %arg1 : i32, i32
  }
}

module attributes {stable_mosaic.version = 11 : i64} {
  func.func @_attention_kernel(%arg0: i32, %arg1: i32, %arg2: memref<8x32xf32, #tpu.memory_space<vmem>>, %arg3: memref<8x32xf32, #tpu.memory_space<vmem>>, %arg4: memref<8x32xf32, #tpu.memory_space<vmem>>, %arg5: memref<1x1x8xf32, #tpu.memory_space<vmem>>, %arg6: memref<8x32xf32, #tpu.memory_space<vmem>>) attributes {dimension_semantics = [#tpu.dimension_semantics<parallel>, #tpu.dimension_semantics<parallel>], iteration_bounds = array<i64: 2, 1>, scalar_prefetch = 0 : i64, scratch_operands = 0 : i64, tpu.core_type = #tpu.core_type<tc>, window_params = [{transform_indices = @transform_0, window_bounds = array<i64: 8, 32>}, {transform_indices = @transform_1, window_bounds = array<i64: 8, 32>}, {transform_indices = @transform_2, window_bounds = array<i64: 8, 32>}, {transform_indices = @transform_3, window_bounds = array<i64: 1, 1, 8>}, {transform_indices = @transform_4, window_bounds = array<i64: 8, 32>}]} {
    %c0 = arith.constant 0 : index
    %c0_0 = arith.constant 0 : index
    %c0_1 = arith.constant 0 : index
    %0 = vector.load %arg5[%c0, %c0_0, %c0_1] : memref<1x1x8xf32, #tpu.memory_space<vmem>>, vector<1x1x8xf32>
    %1 = vector.shape_cast %0 : vector<1x1x8xf32> to vector<1x8xf32>
    %c0_2 = arith.constant 0 : index
    %c0_3 = arith.constant 0 : index
    %2 = vector.load %arg2[%c0_2, %c0_3] : memref<8x32xf32, #tpu.memory_space<vmem>>, vector<8x16xf32>
    %cst = arith.constant 2.500000e-01 : f32
    %3 = vector.broadcast %cst : f32 to vector<8x16xf32>
    %4 = arith.mulf %2, %3 : vector<8x16xf32>
    %c0_4 = arith.constant 0 : index
    %c0_5 = arith.constant 0 : index
    %5 = vector.load %arg3[%c0_4, %c0_5] : memref<8x32xf32, #tpu.memory_space<vmem>>, vector<8x16xf32>
    %c0_6 = arith.constant 0 : index
    %c0_7 = arith.constant 0 : index
    %6 = vector.load %arg4[%c0_6, %c0_7] : memref<8x32xf32, #tpu.memory_space<vmem>>, vector<8x16xf32>
    %cst_8 = arith.constant dense<0.000000e+00> : vector<8x8xf32>
    %7 = tpu.matmul %4, %5, %cst_8 {dimension_numbers = #tpu.dot_dimension_numbers<[1], [1], [0], [0], [0, 0, 1, 0], [], []>} : vector<8x16xf32>, vector<8x16xf32>, vector<8x8xf32> -> vector<8x8xf32>
    %8 = vector.broadcast %1 : vector<1x8xf32> to vector<8x8xf32>
    %9 = arith.addf %7, %8 : vector<8x8xf32>
    %cst_9 = arith.constant dense<0xFF800000> : vector<8xf32>
    %10 = vector.multi_reduction <maximumf>, %9, %cst_9 [1] : vector<8x8xf32> to vector<8xf32>
    %11 = vector.shape_cast %10 : vector<8xf32> to vector<8x1xf32>
    %12 = vector.broadcast %11 : vector<8x1xf32> to vector<8x8xf32>
    %13 = arith.subf %9, %12 : vector<8x8xf32>
    %14 = math.exp %13 : vector<8x8xf32>
    %cst_10 = arith.constant dense<0.000000e+00> : vector<8xf32>
    %15 = vector.multi_reduction <add>, %14, %cst_10 [1] : vector<8x8xf32> to vector<8xf32>
    %16 = vector.shape_cast %15 : vector<8xf32> to vector<8x1xf32>
    %17 = tpu.reciprocal %16 {approx = true} : vector<8x1xf32> -> vector<8x1xf32>
    %18 = vector.broadcast %17 : vector<8x1xf32> to vector<8x8xf32>
    %19 = arith.mulf %14, %18 : vector<8x8xf32>
    %cst_11 = arith.constant dense<0.000000e+00> : vector<8x16xf32>
    %20 = tpu.matmul %19, %6, %cst_11 {dimension_numbers = #tpu.dot_dimension_numbers<[1], [0], [0], [1], [0, 0, 1, 1], [], []>} : vector<8x8xf32>, vector<8x16xf32>, vector<8x16xf32> -> vector<8x16xf32>
    %c0_12 = arith.constant 0 : index
    %c16 = arith.constant 16 : index
    %21 = vector.load %arg2[%c0_12, %c16] : memref<8x32xf32, #tpu.memory_space<vmem>>, vector<8x16xf32>
    %cst_13 = arith.constant 2.500000e-01 : f32
    %22 = vector.broadcast %cst_13 : f32 to vector<8x16xf32>
    %23 = arith.mulf %21, %22 : vector<8x16xf32>
    %c0_14 = arith.constant 0 : index
    %c16_15 = arith.constant 16 : index
    %24 = vector.load %arg3[%c0_14, %c16_15] : memref<8x32xf32, #tpu.memory_space<vmem>>, vector<8x16xf32>
    %c0_16 = arith.constant 0 : index
    %c16_17 = arith.constant 16 : index
    %25 = vector.load %arg4[%c0_16, %c16_17] : memref<8x32xf32, #tpu.memory_space<vmem>>, vector<8x16xf32>
    %cst_18 = arith.constant dense<0.000000e+00> : vector<8x8xf32>
    %26 = tpu.matmul %23, %24, %cst_18 {dimension_numbers = #tpu.dot_dimension_numbers<[1], [1], [0], [0], [0, 0, 1, 0], [], []>} : vector<8x16xf32>, vector<8x16xf32>, vector<8x8xf32> -> vector<8x8xf32>
    %27 = vector.broadcast %1 : vector<1x8xf32> to vector<8x8xf32>
    %28 = arith.addf %26, %27 : vector<8x8xf32>
    %cst_19 = arith.constant dense<0xFF800000> : vector<8xf32>
    %29 = vector.multi_reduction <maximumf>, %28, %cst_19 [1] : vector<8x8xf32> to vector<8xf32>
    %30 = vector.shape_cast %29 : vector<8xf32> to vector<8x1xf32>
    %31 = vector.broadcast %30 : vector<8x1xf32> to vector<8x8xf32>
    %32 = arith.subf %28, %31 : vector<8x8xf32>
    %33 = math.exp %32 : vector<8x8xf32>
    %cst_20 = arith.constant dense<0.000000e+00> : vector<8xf32>
    %34 = vector.multi_reduction <add>, %33, %cst_20 [1] : vector<8x8xf32> to vector<8xf32>
    %35 = vector.shape_cast %34 : vector<8xf32> to vector<8x1xf32>
    %36 = tpu.reciprocal %35 {approx = true} : vector<8x1xf32> -> vector<8x1xf32>
    %37 = vector.broadcast %36 : vector<8x1xf32> to vector<8x8xf32>
    %38 = arith.mulf %33, %37 : vector<8x8xf32>
    %cst_21 = arith.constant dense<0.000000e+00> : vector<8x16xf32>
    %39 = tpu.matmul %38, %25, %cst_21 {dimension_numbers = #tpu.dot_dimension_numbers<[1], [0], [0], [1], [0, 0, 1, 1], [], []>} : vector<8x8xf32>, vector<8x16xf32>, vector<8x16xf32> -> vector<8x16xf32>
    %40 = tpu.concatenate %20, %39 in 1 : vector<8x16xf32>, vector<8x16xf32> -> vector<8x32xf32>
    %c0_22 = arith.constant 0 : index
    %c0_23 = arith.constant 0 : index
    %41 = vector.load %arg6[%c0_22, %c0_23] : memref<8x32xf32, #tpu.memory_space<vmem>>, vector<8x32xf32>
    tpu.vector_store %arg6[%c0_22, %c0_23], %40 {strides = array<i32>} : memref<8x32xf32, #tpu.memory_space<vmem>>, vector<8x32xf32>,
    return
  }
  func.func @transform_0(%arg0: i32, %arg1: i32) -> (i32, i32) {
    %c0_i32 = arith.constant 0 : i32
    return %arg0, %arg1 : i32, i32
  }
  func.func @transform_1(%arg0: i32, %arg1: i32) -> (i32, i32) {
    %c0_i32 = arith.constant 0 : i32
    return %arg0, %arg1 : i32, i32
  }
  func.func @transform_2(%arg0: i32, %arg1: i32) -> (i32, i32) {
    %c0_i32 = arith.constant 0 : i32
    return %arg0, %arg1 : i32, i32
  }
  func.func @transform_3(%arg0: i32, %arg1: i32) -> (i32, i32, i32) {
    %c0_i32 = arith.constant 0 : i32
    %c0_i32_0 = arith.constant 0 : i32
    %c0_i32_1 = arith.constant 0 : i32
    return %arg0, %c0_i32, %c0_i32_0 : i32, i32, i32
  }
  func.func @transform_4(%arg0: i32, %arg1: i32) -> (i32, i32) {
    %c0_i32 = arith.constant 0 : i32
    return %arg0, %arg1 : i32, i32
  }
}

module attributes {stable_mosaic.version = 11 : i64} {
  func.func @_layernorm_kernel(%arg0: i32, %arg1: memref<16x32xf32, #tpu.memory_space<vmem>>, %arg2: memref<1x32xf32, #tpu.memory_space<vmem>>, %arg3: memref<1x32xf32, #tpu.memory_space<vmem>>, %arg4: memref<16x32xf32, #tpu.memory_space<vmem>>) attributes {dimension_semantics = [#tpu.dimension_semantics<parallel>], iteration_bounds = array<i64: 1>, scalar_prefetch = 0 : i64, scratch_operands = 0 : i64, tpu.core_type = #tpu.core_type<tc>, window_params = [{transform_indices = @transform_0, window_bounds = array<i64: 16, 32>}, {pipeline_mode = #tpu.pipeline_mode<synchronous>, transform_indices = @transform_1, window_bounds = array<i64: 1, 32>}, {pipeline_mode = #tpu.pipeline_mode<synchronous>, transform_indices = @transform_2, window_bounds = array<i64: 1, 32>}, {transform_indices = @transform_3, window_bounds = array<i64: 16, 32>}]} {
    %c0 = arith.constant 0 : index
    %c0_0 = arith.constant 0 : index
    %0 = vector.load %arg1[%c0, %c0_0] : memref<16x32xf32, #tpu.memory_space<vmem>>, vector<16x32xf32>
    %cst = arith.constant dense<0.000000e+00> : vector<16xf32>
    %1 = vector.multi_reduction <add>, %0, %cst [1] : vector<16x32xf32> to vector<16xf32>
    %2 = vector.shape_cast %1 : vector<16xf32> to vector<16x1xf32>
    %cst_1 = arith.constant 3.200000e+01 : f32
    %3 = vector.broadcast %cst_1 : f32 to vector<16x1xf32>
    %4 = arith.divf %2, %3 : vector<16x1xf32>
    %5 = vector.broadcast %4 : vector<16x1xf32> to vector<16x32xf32>
    %6 = arith.subf %0, %5 : vector<16x32xf32>
    %7 = arith.mulf %6, %6 : vector<16x32xf32>
    %cst_2 = arith.constant dense<0.000000e+00> : vector<16xf32>
    %8 = vector.multi_reduction <add>, %7, %cst_2 [1] : vector<16x32xf32> to vector<16xf32>
    %9 = vector.shape_cast %8 : vector<16xf32> to vector<16x1xf32>
    %cst_3 = arith.constant 3.200000e+01 : f32
    %10 = vector.broadcast %cst_3 : f32 to vector<16x1xf32>
    %11 = arith.divf %9, %10 : vector<16x1xf32>
    %12 = vector.broadcast %4 : vector<16x1xf32> to vector<16x32xf32>
    %13 = arith.subf %0, %12 : vector<16x32xf32>
    %cst_4 = arith.constant 9.99999996E-13 : f32
    %14 = vector.broadcast %cst_4 : f32 to vector<16x1xf32>
    %15 = arith.addf %11, %14 : vector<16x1xf32>
    %16 = math.rsqrt %15 : vector<16x1xf32>
    %17 = vector.broadcast %16 : vector<16x1xf32> to vector<16x32xf32>
    %18 = arith.mulf %13, %17 : vector<16x32xf32>
    %c0_5 = arith.constant 0 : index
    %c0_6 = arith.constant 0 : index
    %19 = vector.load %arg2[%c0_5, %c0_6] : memref<1x32xf32, #tpu.memory_space<vmem>>, vector<1x32xf32>
    %20 = vector.broadcast %19 : vector<1x32xf32> to vector<16x32xf32>
    %21 = arith.mulf %18, %20 : vector<16x32xf32>
    %c0_7 = arith.constant 0 : index
    %c0_8 = arith.constant 0 : index
    %22 = vector.load %arg3[%c0_7, %c0_8] : memref<1x32xf32, #tpu.memory_space<vmem>>, vector<1x32xf32>
    %23 = vector.broadcast %22 : vector<1x32xf32> to vector<16x32xf32>
    %24 = arith.addf %21, %23 : vector<16x32xf32>
    %c0_9 = arith.constant 0 : index
    %c0_10 = arith.constant 0 : index
    %25 = vector.load %arg4[%c0_9, %c0_10] : memref<16x32xf32, #tpu.memory_space<vmem>>, vector<16x32xf32>
    tpu.vector_store %arg4[%c0_9, %c0_10], %24 {strides = array<i32>} : memref<16x32xf32, #tpu.memory_space<vmem>>, vector<16x32xf32>,
    return
  }
  func.func @transform_0(%arg0: i32) -> (i32, i32) {
    %c0_i32 = arith.constant 0 : i32
    %c0_i32_0 = arith.constant 0 : i32
    return %arg0, %c0_i32 : i32, i32
  }
  func.func @transform_1(%arg0: i32) -> (i32, i32) {
    %c0_i32 = arith.constant 0 : i32
    %c0_i32_0 = arith.constant 0 : i32
    %c0_i32_1 = arith.constant 0 : i32
    return %c0_i32, %c0_i32_0 : i32, i32
  }
  func.func @transform_2(%arg0: i32) -> (i32, i32) {
    %c0_i32 = arith.constant 0 : i32
    %c0_i32_0 = arith.constant 0 : i32
    %c0_i32_1 = arith.constant 0 : i32
    return %c0_i32, %c0_i32_0 : i32, i32
  }
  func.func @transform_3(%arg0: i32) -> (i32, i32) {
    %c0_i32 = arith.constant 0 : i32
    %c0_i32_0 = arith.constant 0 : i32
    return %arg0, %c0_i32 : i32, i32
  }
}

module attributes {stable_mosaic.version = 11 : i64} {
  func.func @_linear_kernel(%arg0: i32, %arg1: i32, %arg2: i32, %arg3: memref<16x32xf32, #tpu.memory_space<vmem>>, %arg4: memref<32x32xf32, #tpu.memory_space<vmem>>, %arg5: memref<1x32xf32, #tpu.memory_space<vmem>>, %arg6: memref<16x32xf32, #tpu.memory_space<vmem>>, %arg7: memref<16x32xf32, #tpu.memory_space<vmem>>) attributes {dimension_semantics = [#tpu.dimension_semantics<parallel>, #tpu.dimension_semantics<parallel>, #tpu.dimension_semantics<arbitrary>], iteration_bounds = array<i64: 1, 1, 1>, scalar_prefetch = 0 : i64, scratch_operands = 1 : i64, tpu.core_type = #tpu.core_type<tc>, window_params = [{transform_indices = @transform_0, window_bounds = array<i64: 16, 32>}, {transform_indices = @transform_1, window_bounds = array<i64: 32, 32>}, {transform_indices = @transform_2, window_bounds = array<i64: 1, 32>}, {transform_indices = @transform_3, window_bounds = array<i64: 16, 32>}]} {
    %c0_i32 = arith.constant 0 : i32
    %0 = arith.cmpi eq, %arg2, %c0_i32 : i32
    %1 = arith.extui %0 : i1 to i32
    %c0_i32_0 = arith.constant 0 : i32
    %2 = arith.cmpi ne, %1, %c0_i32_0 : i32
    scf.if %2 {
      %cst_10 = arith.constant 0.000000e+00 : f32
      %12 = vector.broadcast %cst_10 : f32 to vector<16x32xf32>
      %c0_11 = arith.constant 0 : index
      %c0_12 = arith.constant 0 : index
      %13 = vector.load %arg7[%c0_11, %c0_12] : memref<16x32xf32, #tpu.memory_space<vmem>>, vector<16x32xf32>
      tpu.vector_store %arg7[%c0_11, %c0_12], %12 {strides = array<i32>} : memref<16x32xf32, #tpu.memory_space<vmem>>, vector<16x32xf32>,
    } else {
    }
    %c0 = arith.constant 0 : index
    %c0_1 = arith.constant 0 : index
    %3 = vector.load %arg7[%c0, %c0_1] : memref<16x32xf32, #tpu.memory_space<vmem>>, vector<16x32xf32>
    %c0_2 = arith.constant 0 : index
    %c0_3 = arith.constant 0 : index
    %4 = vector.load %arg3[%c0_2, %c0_3] : memref<16x32xf32, #tpu.memory_space<vmem>>, vector<16x32xf32>
    %c0_4 = arith.constant 0 : index
    %c0_5 = arith.constant 0 : index
    %5 = vector.load %arg4[%c0_4, %c0_5] : memref<32x32xf32, #tpu.memory_space<vmem>>, vector<32x32xf32>
    %cst = arith.constant dense<0.000000e+00> : vector<16x32xf32>
    %6 = tpu.matmul %4, %5, %cst {dimension_numbers = #tpu.dot_dimension_numbers<[1], [0], [0], [1], [0, 0, 1, 1], [], []>} : vector<16x32xf32>, vector<32x32xf32>, vector<16x32xf32> -> vector<16x32xf32>
    %7 = arith.addf %3, %6 : vector<16x32xf32>
    %c0_6 = arith.constant 0 : index
    %c0_7 = arith.constant 0 : index
    %8 = vector.load %arg7[%c0_6, %c0_7] : memref<16x32xf32, #tpu.memory_space<vmem>>, vector<16x32xf32>
    tpu.vector_store %arg7[%c0_6, %c0_7], %7 {strides = array<i32>} : memref<16x32xf32, #tpu.memory_space<vmem>>, vector<16x32xf32>,
    %c0_i32_8 = arith.constant 0 : i32
    %9 = arith.cmpi eq, %arg2, %c0_i32_8 : i32
    %10 = arith.extui %9 : i1 to i32
    %c0_i32_9 = arith.constant 0 : i32
    %11 = arith.cmpi ne, %10, %c0_i32_9 : i32
    scf.if %11 {
      %c0_10 = arith.constant 0 : index
      %c0_11 = arith.constant 0 : index
      %12 = vector.load %arg7[%c0_10, %c0_11] : memref<16x32xf32, #tpu.memory_space<vmem>>, vector<16x32xf32>
      %c0_12 = arith.constant 0 : index
      %c0_13 = arith.constant 0 : index
      %13 = vector.load %arg5[%c0_12, %c0_13] : memref<1x32xf32, #tpu.memory_space<vmem>>, vector<1x32xf32>
      %14 = vector.broadcast %13 : vector<1x32xf32> to vector<16x32xf32>
      %15 = arith.addf %12, %14 : vector<16x32xf32>
      %c0_14 = arith.constant 0 : index
      %c0_15 = arith.constant 0 : index
      %16 = vector.load %arg6[%c0_14, %c0_15] : memref<16x32xf32, #tpu.memory_space<vmem>>, vector<16x32xf32>
      tpu.vector_store %arg6[%c0_14, %c0_15], %15 {strides = array<i32>} : memref<16x32xf32, #tpu.memory_space<vmem>>, vector<16x32xf32>,
    } else {
    }
    return
  }
  func.func @transform_0(%arg0: i32, %arg1: i32, %arg2: i32) -> (i32, i32) {
    %c0_i32 = arith.constant 0 : i32
    return %arg0, %arg2 : i32, i32
  }
  func.func @transform_1(%arg0: i32, %arg1: i32, %arg2: i32) -> (i32, i32) {
    %c0_i32 = arith.constant 0 : i32
    return %arg2, %arg1 : i32, i32
  }
  func.func @transform_2(%arg0: i32, %arg1: i32, %arg2: i32) -> (i32, i32) {
    %c0_i32 = arith.constant 0 : i32
    %c0_i32_0 = arith.constant 0 : i32
    return %c0_i32, %arg1 : i32, i32
  }
  func.func @transform_3(%arg0: i32, %arg1: i32, %arg2: i32) -> (i32, i32) {
    %c0_i32 = arith.constant 0 : i32
    return %arg0, %arg1 : i32, i32
  }
}

module attributes {stable_mosaic.version = 11 : i64} {
  func.func @_linear_kernel(%arg0: i32, %arg1: i32, %arg2: i32, %arg3: memref<16x32xf32, #tpu.memory_space<vmem>>, %arg4: memref<32x64xf32, #tpu.memory_space<vmem>>, %arg5: memref<1x64xf32, #tpu.memory_space<vmem>>, %arg6: memref<16x64xf32, #tpu.memory_space<vmem>>, %arg7: memref<16x64xf32, #tpu.memory_space<vmem>>) attributes {dimension_semantics = [#tpu.dimension_semantics<parallel>, #tpu.dimension_semantics<parallel>, #tpu.dimension_semantics<arbitrary>], iteration_bounds = array<i64: 1, 1, 1>, scalar_prefetch = 0 : i64, scratch_operands = 1 : i64, tpu.core_type = #tpu.core_type<tc>, window_params = [{transform_indices = @transform_0, window_bounds = array<i64: 16, 32>}, {transform_indices = @transform_1, window_bounds = array<i64: 32, 64>}, {transform_indices = @transform_2, window_bounds = array<i64: 1, 64>}, {transform_indices = @transform_3, window_bounds = array<i64: 16, 64>}]} {
    %c0_i32 = arith.constant 0 : i32
    %0 = arith.cmpi eq, %arg2, %c0_i32 : i32
    %1 = arith.extui %0 : i1 to i32
    %c0_i32_0 = arith.constant 0 : i32
    %2 = arith.cmpi ne, %1, %c0_i32_0 : i32
    scf.if %2 {
      %cst_10 = arith.constant 0.000000e+00 : f32
      %12 = vector.broadcast %cst_10 : f32 to vector<16x64xf32>
      %c0_11 = arith.constant 0 : index
      %c0_12 = arith.constant 0 : index
      %13 = vector.load %arg7[%c0_11, %c0_12] : memref<16x64xf32, #tpu.memory_space<vmem>>, vector<16x64xf32>
      tpu.vector_store %arg7[%c0_11, %c0_12], %12 {strides = array<i32>} : memref<16x64xf32, #tpu.memory_space<vmem>>, vector<16x64xf32>,
    } else {
    }
    %c0 = arith.constant 0 : index
    %c0_1 = arith.constant 0 : index
    %3 = vector.load %arg7[%c0, %c0_1] : memref<16x64xf32, #tpu.memory_space<vmem>>, vector<16x64xf32>
    %c0_2 = arith.constant 0 : index
    %c0_3 = arith.constant 0 : index
    %4 = vector.load %arg3[%c0_2, %c0_3] : memref<16x32xf32, #tpu.memory_space<vmem>>, vector<16x32xf32>
    %c0_4 = arith.constant 0 : index
    %c0_5 = arith.constant 0 : index
    %5 = vector.load %arg4[%c0_4, %c0_5] : memref<32x64xf32, #tpu.memory_space<vmem>>, vector<32x64xf32>
    %cst = arith.constant dense<0.000000e+00> : vector<16x64xf32>
    %6 = tpu.matmul %4, %5, %cst {dimension_numbers = #tpu.dot_dimension_numbers<[1], [0], [0], [1], [0, 0, 1, 1], [], []>} : vector<16x32xf32>, vector<32x64xf32>, vector<16x64xf32> -> vector<16x64xf32>
    %7 = arith.addf %3, %6 : vector<16x64xf32>
    %c0_6 = arith.constant 0 : index
    %c0_7 = arith.constant 0 : index
    %8 = vector.load %arg7[%c0_6, %c0_7] : memref<16x64xf32, #tpu.memory_space<vmem>>, vector<16x64xf32>
    tpu.vector_store %arg7[%c0_6, %c0_7], %7 {strides = array<i32>} : memref<16x64xf32, #tpu.memory_space<vmem>>, vector<16x64xf32>,
    %c0_i32_8 = arith.constant 0 : i32
    %9 = arith.cmpi eq, %arg2, %c0_i32_8 : i32
    %10 = arith.extui %9 : i1 to i32
    %c0_i32_9 = arith.constant 0 : i32
    %11 = arith.cmpi ne, %10, %c0_i32_9 : i32
    scf.if %11 {
      %c0_10 = arith.constant 0 : index
      %c0_11 = arith.constant 0 : index
      %12 = vector.load %arg7[%c0_10, %c0_11] : memref<16x64xf32, #tpu.memory_space<vmem>>, vector<16x64xf32>
      %c0_12 = arith.constant 0 : index
      %c0_13 = arith.constant 0 : index
      %13 = vector.load %arg5[%c0_12, %c0_13] : memref<1x64xf32, #tpu.memory_space<vmem>>, vector<1x64xf32>
      %14 = vector.broadcast %13 : vector<1x64xf32> to vector<16x64xf32>
      %15 = arith.addf %12, %14 : vector<16x64xf32>
      %16 = arith.mulf %15, %15 : vector<16x64xf32>
      %17 = arith.mulf %15, %16 : vector<16x64xf32>
      %cst_14 = arith.constant 4.471500e-02 : f32
      %18 = vector.broadcast %cst_14 : f32 to vector<16x64xf32>
      %19 = arith.mulf %18, %17 : vector<16x64xf32>
      %20 = arith.addf %15, %19 : vector<16x64xf32>
      %cst_15 = arith.constant 0.797884583 : f32
      %21 = vector.broadcast %cst_15 : f32 to vector<16x64xf32>
      %22 = arith.mulf %21, %20 : vector<16x64xf32>
      %23 = math.tanh %22 : vector<16x64xf32>
      %cst_16 = arith.constant 1.000000e+00 : f32
      %24 = vector.broadcast %cst_16 : f32 to vector<16x64xf32>
      %25 = arith.addf %24, %23 : vector<16x64xf32>
      %cst_17 = arith.constant 5.000000e-01 : f32
      %26 = vector.broadcast %cst_17 : f32 to vector<16x64xf32>
      %27 = arith.mulf %26, %25 : vector<16x64xf32>
      %28 = arith.mulf %15, %27 : vector<16x64xf32>
      %c0_18 = arith.constant 0 : index
      %c0_19 = arith.constant 0 : index
      %29 = vector.load %arg6[%c0_18, %c0_19] : memref<16x64xf32, #tpu.memory_space<vmem>>, vector<16x64xf32>
      tpu.vector_store %arg6[%c0_18, %c0_19], %28 {strides = array<i32>} : memref<16x64xf32, #tpu.memory_space<vmem>>, vector<16x64xf32>,
    } else {
    }
    return
  }
  func.func @transform_0(%arg0: i32, %arg1: i32, %arg2: i32) -> (i32, i32) {
    %c0_i32 = arith.constant 0 : i32
    return %arg0, %arg2 : i32, i32
  }
  func.func @transform_1(%arg0: i32, %arg1: i32, %arg2: i32) -> (i32, i32) {
    %c0_i32 = arith.constant 0 : i32
    return %arg2, %arg1 : i32, i32
  }
  func.func @transform_2(%arg0: i32, %arg1: i32, %arg2: i32) -> (i32, i32) {
    %c0_i32 = arith.constant 0 : i32
    %c0_i32_0 = arith.constant 0 : i32
    return %c0_i32, %arg1 : i32, i32
  }
  func.func @transform_3(%arg0: i32, %arg1: i32, %arg2: i32) -> (i32, i32) {
    %c0_i32 = arith.constant 0 : i32
    return %arg0, %arg1 : i32, i32
  }
}

module attributes {stable_mosaic.version = 11 : i64} {
  func.func @_layernorm_kernel(%arg0: i32, %arg1: memref<16x32xf32, #tpu.memory_space<vmem>>, %arg2: memref<16x32xf32, #tpu.memory_space<vmem>>, %arg3: memref<1x32xf32, #tpu.memory_space<vmem>>, %arg4: memref<1x32xf32, #tpu.memory_space<vmem>>, %arg5: memref<16x32xf32, #tpu.memory_space<vmem>>) attributes {dimension_semantics = [#tpu.dimension_semantics<parallel>], iteration_bounds = array<i64: 1>, scalar_prefetch = 0 : i64, scratch_operands = 0 : i64, tpu.core_type = #tpu.core_type<tc>, window_params = [{transform_indices = @transform_0, window_bounds = array<i64: 16, 32>}, {transform_indices = @transform_1, window_bounds = array<i64: 16, 32>}, {pipeline_mode = #tpu.pipeline_mode<synchronous>, transform_indices = @transform_2, window_bounds = array<i64: 1, 32>}, {pipeline_mode = #tpu.pipeline_mode<synchronous>, transform_indices = @transform_3, window_bounds = array<i64: 1, 32>}, {transform_indices = @transform_4, window_bounds = array<i64: 16, 32>}]} {
    %c0 = arith.constant 0 : index
    %c0_0 = arith.constant 0 : index
    %0 = vector.load %arg1[%c0, %c0_0] : memref<16x32xf32, #tpu.memory_space<vmem>>, vector<16x32xf32>
    %c0_1 = arith.constant 0 : index
    %c0_2 = arith.constant 0 : index
    %1 = vector.load %arg2[%c0_1, %c0_2] : memref<16x32xf32, #tpu.memory_space<vmem>>, vector<16x32xf32>
    %2 = arith.addf %0, %1 : vector<16x32xf32>
    %cst = arith.constant dense<0.000000e+00> : vector<16xf32>
    %3 = vector.multi_reduction <add>, %2, %cst [1] : vector<16x32xf32> to vector<16xf32>
    %4 = vector.shape_cast %3 : vector<16xf32> to vector<16x1xf32>
    %cst_3 = arith.constant 3.200000e+01 : f32
    %5 = vector.broadcast %cst_3 : f32 to vector<16x1xf32>
    %6 = arith.divf %4, %5 : vector<16x1xf32>
    %7 = vector.broadcast %6 : vector<16x1xf32> to vector<16x32xf32>
    %8 = arith.subf %2, %7 : vector<16x32xf32>
    %9 = arith.mulf %8, %8 : vector<16x32xf32>
    %cst_4 = arith.constant dense<0.000000e+00> : vector<16xf32>
    %10 = vector.multi_reduction <add>, %9, %cst_4 [1] : vector<16x32xf32> to vector<16xf32>
    %11 = vector.shape_cast %10 : vector<16xf32> to vector<16x1xf32>
    %cst_5 = arith.constant 3.200000e+01 : f32
    %12 = vector.broadcast %cst_5 : f32 to vector<16x1xf32>
    %13 = arith.divf %11, %12 : vector<16x1xf32>
    %14 = vector.broadcast %6 : vector<16x1xf32> to vector<16x32xf32>
    %15 = arith.subf %2, %14 : vector<16x32xf32>
    %cst_6 = arith.constant 9.99999996E-13 : f32
    %16 = vector.broadcast %cst_6 : f32 to vector<16x1xf32>
    %17 = arith.addf %13, %16 : vector<16x1xf32>
    %18 = math.rsqrt %17 : vector<16x1xf32>
    %19 = vector.broadcast %18 : vector<16x1xf32> to vector<16x32xf32>
    %20 = arith.mulf %15, %19 : vector<16x32xf32>
    %c0_7 = arith.constant 0 : index
    %c0_8 = arith.constant 0 : index
    %21 = vector.load %arg3[%c0_7, %c0_8] : memref<1x32xf32, #tpu.memory_space<vmem>>, vector<1x32xf32>
    %22 = vector.broadcast %21 : vector<1x32xf32> to vector<16x32xf32>
    %23 = arith.mulf %20, %22 : vector<16x32xf32>
    %c0_9 = arith.constant 0 : index
    %c0_10 = arith.constant 0 : index
    %24 = vector.load %arg4[%c0_9, %c0_10] : memref<1x32xf32, #tpu.memory_space<vmem>>, vector<1x32xf32>
    %25 = vector.broadcast %24 : vector<1x32xf32> to vector<16x32xf32>
    %26 = arith.addf %23, %25 : vector<16x32xf32>
    %c0_11 = arith.constant 0 : index
    %c0_12 = arith.constant 0 : index
    %27 = vector.load %arg5[%c0_11, %c0_12] : memref<16x32xf32, #tpu.memory_space<vmem>>, vector<16x32xf32>
    tpu.vector_store %arg5[%c0_11, %c0_12], %26 {strides = array<i32>} : memref<16x32xf32, #tpu.memory_space<vmem>>, vector<16x32xf32>,
    return
  }
  func.func @transform_0(%arg0: i32) -> (i32, i32) {
    %c0_i32 = arith.constant 0 : i32
    %c0_i32_0 = arith.constant 0 : i32
    return %arg0, %c0_i32 : i32, i32
  }
  func.func @transform_1(%arg0: i32) -> (i32, i32) {
    %c0_i32 = arith.constant 0 : i32
    %c0_i32_0 = arith.constant 0 : i32
    return %arg0, %c0_i32 : i32, i32
  }
  func.func @transform_2(%arg0: i32) -> (i32, i32) {
    %c0_i32 = arith.constant 0 : i32
    %c0_i32_0 = arith.constant 0 : i32
    %c0_i32_1 = arith.constant 0 : i32
    return %c0_i32, %c0_i32_0 : i32, i32
  }
  func.func @transform_3(%arg0: i32) -> (i32, i32) {
    %c0_i32 = arith.constant 0 : i32
    %c0_i32_0 = arith.constant 0 : i32
    %c0_i32_1 = arith.constant 0 : i32
    return %c0_i32, %c0_i32_0 : i32, i32
  }
  func.func @transform_4(%arg0: i32) -> (i32, i32) {
    %c0_i32 = arith.constant 0 : i32
    %c0_i32_0 = arith.constant 0 : i32
    return %arg0, %c0_i32 : i32, i32
  }
}

module attributes {stable_mosaic.version = 11 : i64} {
  func.func @_linear_kernel(%arg0: i32, %arg1: i32, %arg2: i32, %arg3: memref<16x64xf32, #tpu.memory_space<vmem>>, %arg4: memref<64x32xf32, #tpu.memory_space<vmem>>, %arg5: memref<1x32xf32, #tpu.memory_space<vmem>>, %arg6: memref<16x32xf32, #tpu.memory_space<vmem>>, %arg7: memref<16x32xf32, #tpu.memory_space<vmem>>) attributes {dimension_semantics = [#tpu.dimension_semantics<parallel>, #tpu.dimension_semantics<parallel>, #tpu.dimension_semantics<arbitrary>], iteration_bounds = array<i64: 1, 1, 1>, scalar_prefetch = 0 : i64, scratch_operands = 1 : i64, tpu.core_type = #tpu.core_type<tc>, window_params = [{transform_indices = @transform_0, window_bounds = array<i64: 16, 64>}, {transform_indices = @transform_1, window_bounds = array<i64: 64, 32>}, {transform_indices = @transform_2, window_bounds = array<i64: 1, 32>}, {transform_indices = @transform_3, window_bounds = array<i64: 16, 32>}]} {
    %c0_i32 = arith.constant 0 : i32
    %0 = arith.cmpi eq, %arg2, %c0_i32 : i32
    %1 = arith.extui %0 : i1 to i32
    %c0_i32_0 = arith.constant 0 : i32
    %2 = arith.cmpi ne, %1, %c0_i32_0 : i32
    scf.if %2 {
      %cst_10 = arith.constant 0.000000e+00 : f32
      %12 = vector.broadcast %cst_10 : f32 to vector<16x32xf32>
      %c0_11 = arith.constant 0 : index
      %c0_12 = arith.constant 0 : index
      %13 = vector.load %arg7[%c0_11, %c0_12] : memref<16x32xf32, #tpu.memory_space<vmem>>, vector<16x32xf32>
      tpu.vector_store %arg7[%c0_11, %c0_12], %12 {strides = array<i32>} : memref<16x32xf32, #tpu.memory_space<vmem>>, vector<16x32xf32>,
    } else {
    }
    %c0 = arith.constant 0 : index
    %c0_1 = arith.constant 0 : index
    %3 = vector.load %arg7[%c0, %c0_1] : memref<16x32xf32, #tpu.memory_space<vmem>>, vector<16x32xf32>
    %c0_2 = arith.constant 0 : index
    %c0_3 = arith.constant 0 : index
    %4 = vector.load %arg3[%c0_2, %c0_3] : memref<16x64xf32, #tpu.memory_space<vmem>>, vector<16x64xf32>
    %c0_4 = arith.constant 0 : index
    %c0_5 = arith.constant 0 : index
    %5 = vector.load %arg4[%c0_4, %c0_5] : memref<64x32xf32, #tpu.memory_space<vmem>>, vector<64x32xf32>
    %cst = arith.constant dense<0.000000e+00> : vector<16x32xf32>
    %6 = tpu.matmul %4, %5, %cst {dimension_numbers = #tpu.dot_dimension_numbers<[1], [0], [0], [1], [0, 0, 1, 1], [], []>} : vector<16x64xf32>, vector<64x32xf32>, vector<16x32xf32> -> vector<16x32xf32>
    %7 = arith.addf %3, %6 : vector<16x32xf32>
    %c0_6 = arith.constant 0 : index
    %c0_7 = arith.constant 0 : index
    %8 = vector.load %arg7[%c0_6, %c0_7] : memref<16x32xf32, #tpu.memory_space<vmem>>, vector<16x32xf32>
    tpu.vector_store %arg7[%c0_6, %c0_7], %7 {strides = array<i32>} : memref<16x32xf32, #tpu.memory_space<vmem>>, vector<16x32xf32>,
    %c0_i32_8 = arith.constant 0 : i32
    %9 = arith.cmpi eq, %arg2, %c0_i32_8 : i32
    %10 = arith.extui %9 : i1 to i32
    %c0_i32_9 = arith.constant 0 : i32
    %11 = arith.cmpi ne, %10, %c0_i32_9 : i32
    scf.if %11 {
      %c0_10 = arith.constant 0 : index
      %c0_11 = arith.constant 0 : index
      %12 = vector.load %arg7[%c0_10, %c0_11] : memref<16x32xf32, #tpu.memory_space<vmem>>, vector<16x32xf32>
      %c0_12 = arith.constant 0 : index
      %c0_13 = arith.constant 0 : index
      %13 = vector.load %arg5[%c0_12, %c0_13] : memref<1x32xf32, #tpu.memory_space<vmem>>, vector<1x32xf32>
      %14 = vector.broadcast %13 : vector<1x32xf32> to vector<16x32xf32>
      %15 = arith.addf %12, %14 : vector<16x32xf32>
      %c0_14 = arith.constant 0 : index
      %c0_15 = arith.constant 0 : index
      %16 = vector.load %arg6[%c0_14, %c0_15] : memref<16x32xf32, #tpu.memory_space<vmem>>, vector<16x32xf32>
      tpu.vector_store %arg6[%c0_14, %c0_15], %15 {strides = array<i32>} : memref<16x32xf32, #tpu.memory_space<vmem>>, vector<16x32xf32>,
    } else {
    }
    return
  }
  func.func @transform_0(%arg0: i32, %arg1: i32, %arg2: i32) -> (i32, i32) {
    %c0_i32 = arith.constant 0 : i32
    return %arg0, %arg2 : i32, i32
  }
  func.func @transform_1(%arg0: i32, %arg1: i32, %arg2: i32) -> (i32, i32) {
    %c0_i32 = arith.constant 0 : i32
    return %arg2, %arg1 : i32, i32
  }
  func.func @transform_2(%arg0: i32, %arg1: i32, %arg2: i32) -> (i32, i32) {
    %c0_i32 = arith.constant 0 : i32
    %c0_i32_0 = arith.constant 0 : i32
    return %c0_i32, %arg1 : i32, i32
  }
  func.func @transform_3(%arg0: i32, %arg1: i32, %arg2: i32) -> (i32, i32) {
    %c0_i32 = arith.constant 0 : i32
    return %arg0, %arg1 : i32, i32
  }
}

module attributes {stable_mosaic.version = 11 : i64} {
  func.func @_linear_kernel(%arg0: i32, %arg1: i32, %arg2: i32, %arg3: memref<2x32xf32, #tpu.memory_space<vmem>>, %arg4: memref<32x32xf32, #tpu.memory_space<vmem>>, %arg5: memref<1x32xf32, #tpu.memory_space<vmem>>, %arg6: memref<2x32xf32, #tpu.memory_space<vmem>>, %arg7: memref<2x32xf32, #tpu.memory_space<vmem>>) attributes {dimension_semantics = [#tpu.dimension_semantics<parallel>, #tpu.dimension_semantics<parallel>, #tpu.dimension_semantics<arbitrary>], iteration_bounds = array<i64: 1, 1, 1>, scalar_prefetch = 0 : i64, scratch_operands = 1 : i64, tpu.core_type = #tpu.core_type<tc>, window_params = [{transform_indices = @transform_0, window_bounds = array<i64: 2, 32>}, {transform_indices = @transform_1, window_bounds = array<i64: 32, 32>}, {transform_indices = @transform_2, window_bounds = array<i64: 1, 32>}, {transform_indices = @transform_3, window_bounds = array<i64: 2, 32>}]} {
    %c0_i32 = arith.constant 0 : i32
    %0 = arith.cmpi eq, %arg2, %c0_i32 : i32
    %1 = arith.extui %0 : i1 to i32
    %c0_i32_0 = arith.constant 0 : i32
    %2 = arith.cmpi ne, %1, %c0_i32_0 : i32
    scf.if %2 {
      %cst_10 = arith.constant 0.000000e+00 : f32
      %12 = vector.broadcast %cst_10 : f32 to vector<2x32xf32>
      %c0_11 = arith.constant 0 : index
      %c0_12 = arith.constant 0 : index
      %13 = vector.load %arg7[%c0_11, %c0_12] : memref<2x32xf32, #tpu.memory_space<vmem>>, vector<2x32xf32>
      tpu.vector_store %arg7[%c0_11, %c0_12], %12 {strides = array<i32>} : memref<2x32xf32, #tpu.memory_space<vmem>>, vector<2x32xf32>,
    } else {
    }
    %c0 = arith.constant 0 : index
    %c0_1 = arith.constant 0 : index
    %3 = vector.load %arg7[%c0, %c0_1] : memref<2x32xf32, #tpu.memory_space<vmem>>, vector<2x32xf32>
    %c0_2 = arith.constant 0 : index
    %c0_3 = arith.constant 0 : index
    %4 = vector.load %arg3[%c0_2, %c0_3] : memref<2x32xf32, #tpu.memory_space<vmem>>, vector<2x32xf32>
    %c0_4 = arith.constant 0 : index
    %c0_5 = arith.constant 0 : index
    %5 = vector.load %arg4[%c0_4, %c0_5] : memref<32x32xf32, #tpu.memory_space<vmem>>, vector<32x32xf32>
    %cst = arith.constant dense<0.000000e+00> : vector<2x32xf32>
    %6 = tpu.matmul %4, %5, %cst {dimension_numbers = #tpu.dot_dimension_numbers<[1], [0], [0], [1], [0, 0, 1, 1], [], []>} : vector<2x32xf32>, vector<32x32xf32>, vector<2x32xf32> -> vector<2x32xf32>
    %7 = arith.addf %3, %6 : vector<2x32xf32>
    %c0_6 = arith.constant 0 : index
    %c0_7 = arith.constant 0 : index
    %8 = vector.load %arg7[%c0_6, %c0_7] : memref<2x32xf32, #tpu.memory_space<vmem>>, vector<2x32xf32>
    tpu.vector_store %arg7[%c0_6, %c0_7], %7 {strides = array<i32>} : memref<2x32xf32, #tpu.memory_space<vmem>>, vector<2x32xf32>,
    %c0_i32_8 = arith.constant 0 : i32
    %9 = arith.cmpi eq, %arg2, %c0_i32_8 : i32
    %10 = arith.extui %9 : i1 to i32
    %c0_i32_9 = arith.constant 0 : i32
    %11 = arith.cmpi ne, %10, %c0_i32_9 : i32
    scf.if %11 {
      %c0_10 = arith.constant 0 : index
      %c0_11 = arith.constant 0 : index
      %12 = vector.load %arg7[%c0_10, %c0_11] : memref<2x32xf32, #tpu.memory_space<vmem>>, vector<2x32xf32>
      %c0_12 = arith.constant 0 : index
      %c0_13 = arith.constant 0 : index
      %13 = vector.load %arg5[%c0_12, %c0_13] : memref<1x32xf32, #tpu.memory_space<vmem>>, vector<1x32xf32>
      %14 = vector.broadcast %13 : vector<1x32xf32> to vector<2x32xf32>
      %15 = arith.addf %12, %14 : vector<2x32xf32>
      %16 = arith.mulf %15, %15 : vector<2x32xf32>
      %17 = arith.mulf %15, %16 : vector<2x32xf32>
      %cst_14 = arith.constant 4.471500e-02 : f32
      %18 = vector.broadcast %cst_14 : f32 to vector<2x32xf32>
      %19 = arith.mulf %18, %17 : vector<2x32xf32>
      %20 = arith.addf %15, %19 : vector<2x32xf32>
      %cst_15 = arith.constant 0.797884583 : f32
      %21 = vector.broadcast %cst_15 : f32 to vector<2x32xf32>
      %22 = arith.mulf %21, %20 : vector<2x32xf32>
      %23 = math.tanh %22 : vector<2x32xf32>
      %cst_16 = arith.constant 1.000000e+00 : f32
      %24 = vector.broadcast %cst_16 : f32 to vector<2x32xf32>
      %25 = arith.addf %24, %23 : vector<2x32xf32>
      %cst_17 = arith.constant 5.000000e-01 : f32
      %26 = vector.broadcast %cst_17 : f32 to vector<2x32xf32>
      %27 = arith.mulf %26, %25 : vector<2x32xf32>
      %28 = arith.mulf %15, %27 : vector<2x32xf32>
      %c0_18 = arith.constant 0 : index
      %c0_19 = arith.constant 0 : index
      %29 = vector.load %arg6[%c0_18, %c0_19] : memref<2x32xf32, #tpu.memory_space<vmem>>, vector<2x32xf32>
      tpu.vector_store %arg6[%c0_18, %c0_19], %28 {strides = array<i32>} : memref<2x32xf32, #tpu.memory_space<vmem>>, vector<2x32xf32>,
    } else {
    }
    return
  }
  func.func @transform_0(%arg0: i32, %arg1: i32, %arg2: i32) -> (i32, i32) {
    %c0_i32 = arith.constant 0 : i32
    return %arg0, %arg2 : i32, i32
  }
  func.func @transform_1(%arg0: i32, %arg1: i32, %arg2: i32) -> (i32, i32) {
    %c0_i32 = arith.constant 0 : i32
    return %arg2, %arg1 : i32, i32
  }
  func.func @transform_2(%arg0: i32, %arg1: i32, %arg2: i32) -> (i32, i32) {
    %c0_i32 = arith.constant 0 : i32
    %c0_i32_0 = arith.constant 0 : i32
    return %c0_i32, %arg1 : i32, i32
  }
  func.func @transform_3(%arg0: i32, %arg1: i32, %arg2: i32) -> (i32, i32) {
    %c0_i32 = arith.constant 0 : i32
    return %arg0, %arg1 : i32, i32
  }
}

module attributes {stable_mosaic.version = 11 : i64} {
  func.func @_layernorm_kernel(%arg0: i32, %arg1: memref<2x32xf32, #tpu.memory_space<vmem>>, %arg2: memref<1x32xf32, #tpu.memory_space<vmem>>, %arg3: memref<1x32xf32, #tpu.memory_space<vmem>>, %arg4: memref<2x32xf32, #tpu.memory_space<vmem>>) attributes {dimension_semantics = [#tpu.dimension_semantics<parallel>], iteration_bounds = array<i64: 1>, scalar_prefetch = 0 : i64, scratch_operands = 0 : i64, tpu.core_type = #tpu.core_type<tc>, window_params = [{transform_indices = @transform_0, window_bounds = array<i64: 2, 32>}, {pipeline_mode = #tpu.pipeline_mode<synchronous>, transform_indices = @transform_1, window_bounds = array<i64: 1, 32>}, {pipeline_mode = #tpu.pipeline_mode<synchronous>, transform_indices = @transform_2, window_bounds = array<i64: 1, 32>}, {transform_indices = @transform_3, window_bounds = array<i64: 2, 32>}]} {
    %c0 = arith.constant 0 : index
    %c0_0 = arith.constant 0 : index
    %0 = vector.load %arg1[%c0, %c0_0] : memref<2x32xf32, #tpu.memory_space<vmem>>, vector<2x32xf32>
    %cst = arith.constant dense<0.000000e+00> : vector<2xf32>
    %1 = vector.multi_reduction <add>, %0, %cst [1] : vector<2x32xf32> to vector<2xf32>
    %2 = vector.shape_cast %1 : vector<2xf32> to vector<2x1xf32>
    %cst_1 = arith.constant 3.200000e+01 : f32
    %3 = vector.broadcast %cst_1 : f32 to vector<2x1xf32>
    %4 = arith.divf %2, %3 : vector<2x1xf32>
    %5 = vector.broadcast %4 : vector<2x1xf32> to vector<2x32xf32>
    %6 = arith.subf %0, %5 : vector<2x32xf32>
    %7 = arith.mulf %6, %6 : vector<2x32xf32>
    %cst_2 = arith.constant dense<0.000000e+00> : vector<2xf32>
    %8 = vector.multi_reduction <add>, %7, %cst_2 [1] : vector<2x32xf32> to vector<2xf32>
    %9 = vector.shape_cast %8 : vector<2xf32> to vector<2x1xf32>
    %cst_3 = arith.constant 3.200000e+01 : f32
    %10 = vector.broadcast %cst_3 : f32 to vector<2x1xf32>
    %11 = arith.divf %9, %10 : vector<2x1xf32>
    %12 = vector.broadcast %4 : vector<2x1xf32> to vector<2x32xf32>
    %13 = arith.subf %0, %12 : vector<2x32xf32>
    %cst_4 = arith.constant 9.99999996E-13 : f32
    %14 = vector.broadcast %cst_4 : f32 to vector<2x1xf32>
    %15 = arith.addf %11, %14 : vector<2x1xf32>
    %16 = math.rsqrt %15 : vector<2x1xf32>
    %17 = vector.broadcast %16 : vector<2x1xf32> to vector<2x32xf32>
    %18 = arith.mulf %13, %17 : vector<2x32xf32>
    %c0_5 = arith.constant 0 : index
    %c0_6 = arith.constant 0 : index
    %19 = vector.load %arg2[%c0_5, %c0_6] : memref<1x32xf32, #tpu.memory_space<vmem>>, vector<1x32xf32>
    %20 = vector.broadcast %19 : vector<1x32xf32> to vector<2x32xf32>
    %21 = arith.mulf %18, %20 : vector<2x32xf32>
    %c0_7 = arith.constant 0 : index
    %c0_8 = arith.constant 0 : index
    %22 = vector.load %arg3[%c0_7, %c0_8] : memref<1x32xf32, #tpu.memory_space<vmem>>, vector<1x32xf32>
    %23 = vector.broadcast %22 : vector<1x32xf32> to vector<2x32xf32>
    %24 = arith.addf %21, %23 : vector<2x32xf32>
    %c0_9 = arith.constant 0 : index
    %c0_10 = arith.constant 0 : index
    %25 = vector.load %arg4[%c0_9, %c0_10] : memref<2x32xf32, #tpu.memory_space<vmem>>, vector<2x32xf32>
    tpu.vector_store %arg4[%c0_9, %c0_10], %24 {strides = array<i32>} : memref<2x32xf32, #tpu.memory_space<vmem>>, vector<2x32xf32>,
    return
  }
  func.func @transform_0(%arg0: i32) -> (i32, i32) {
    %c0_i32 = arith.constant 0 : i32
    %c0_i32_0 = arith.constant 0 : i32
    return %arg0, %c0_i32 : i32, i32
  }
  func.func @transform_1(%arg0: i32) -> (i32, i32) {
    %c0_i32 = arith.constant 0 : i32
    %c0_i32_0 = arith.constant 0 : i32
    %c0_i32_1 = arith.constant 0 : i32
    return %c0_i32, %c0_i32_0 : i32, i32
  }
  func.func @transform_2(%arg0: i32) -> (i32, i32) {
    %c0_i32 = arith.constant 0 : i32
    %c0_i32_0 = arith.constant 0 : i32
    %c0_i32_1 = arith.constant 0 : i32
    return %c0_i32, %c0_i32_0 : i32, i32
  }
  func.func @transform_3(%arg0: i32) -> (i32, i32) {
    %c0_i32 = arith.constant 0 : i32
    %c0_i32_0 = arith.constant 0 : i32
    return %arg0, %c0_i32 : i32, i32
  }
}

module attributes {stable_mosaic.version = 11 : i64} {
  func.func @_linear_kernel(%arg0: i32, %arg1: i32, %arg2: i32, %arg3: memref<2x32xf32, #tpu.memory_space<vmem>>, %arg4: memref<32x128xf32, #tpu.memory_space<vmem>>, %arg5: memref<1x128xf32, #tpu.memory_space<vmem>>, %arg6: memref<2x128xf32, #tpu.memory_space<vmem>>, %arg7: memref<2x128xf32, #tpu.memory_space<vmem>>) attributes {dimension_semantics = [#tpu.dimension_semantics<parallel>, #tpu.dimension_semantics<parallel>, #tpu.dimension_semantics<arbitrary>], iteration_bounds = array<i64: 1, 1, 1>, scalar_prefetch = 0 : i64, scratch_operands = 1 : i64, tpu.core_type = #tpu.core_type<tc>, window_params = [{transform_indices = @transform_0, window_bounds = array<i64: 2, 32>}, {transform_indices = @transform_1, window_bounds = array<i64: 32, 128>}, {transform_indices = @transform_2, window_bounds = array<i64: 1, 128>}, {transform_indices = @transform_3, window_bounds = array<i64: 2, 128>}]} {
    %c0_i32 = arith.constant 0 : i32
    %0 = arith.cmpi eq, %arg2, %c0_i32 : i32
    %1 = arith.extui %0 : i1 to i32
    %c0_i32_0 = arith.constant 0 : i32
    %2 = arith.cmpi ne, %1, %c0_i32_0 : i32
    scf.if %2 {
      %cst_10 = arith.constant 0.000000e+00 : f32
      %12 = vector.broadcast %cst_10 : f32 to vector<2x128xf32>
      %c0_11 = arith.constant 0 : index
      %c0_12 = arith.constant 0 : index
      %13 = vector.load %arg7[%c0_11, %c0_12] : memref<2x128xf32, #tpu.memory_space<vmem>>, vector<2x128xf32>
      tpu.vector_store %arg7[%c0_11, %c0_12], %12 {strides = array<i32>} : memref<2x128xf32, #tpu.memory_space<vmem>>, vector<2x128xf32>,
    } else {
    }
    %c0 = arith.constant 0 : index
    %c0_1 = arith.constant 0 : index
    %3 = vector.load %arg7[%c0, %c0_1] : memref<2x128xf32, #tpu.memory_space<vmem>>, vector<2x128xf32>
    %c0_2 = arith.constant 0 : index
    %c0_3 = arith.constant 0 : index
    %4 = vector.load %arg3[%c0_2, %c0_3] : memref<2x32xf32, #tpu.memory_space<vmem>>, vector<2x32xf32>
    %c0_4 = arith.constant 0 : index
    %c0_5 = arith.constant 0 : index
    %5 = vector.load %arg4[%c0_4, %c0_5] : memref<32x128xf32, #tpu.memory_space<vmem>>, vector<32x128xf32>
    %cst = arith.constant dense<0.000000e+00> : vector<2x128xf32>
    %6 = tpu.matmul %4, %5, %cst {dimension_numbers = #tpu.dot_dimension_numbers<[1], [0], [0], [1], [0, 0, 1, 1], [], []>} : vector<2x32xf32>, vector<32x128xf32>, vector<2x128xf32> -> vector<2x128xf32>
    %7 = arith.addf %3, %6 : vector<2x128xf32>
    %c0_6 = arith.constant 0 : index
    %c0_7 = arith.constant 0 : index
    %8 = vector.load %arg7[%c0_6, %c0_7] : memref<2x128xf32, #tpu.memory_space<vmem>>, vector<2x128xf32>
    tpu.vector_store %arg7[%c0_6, %c0_7], %7 {strides = array<i32>} : memref<2x128xf32, #tpu.memory_space<vmem>>, vector<2x128xf32>,
    %c0_i32_8 = arith.constant 0 : i32
    %9 = arith.cmpi eq, %arg2, %c0_i32_8 : i32
    %10 = arith.extui %9 : i1 to i32
    %c0_i32_9 = arith.constant 0 : i32
    %11 = arith.cmpi ne, %10, %c0_i32_9 : i32
    scf.if %11 {
      %c0_10 = arith.constant 0 : index
      %c0_11 = arith.constant 0 : index
      %12 = vector.load %arg7[%c0_10, %c0_11] : memref<2x128xf32, #tpu.memory_space<vmem>>, vector<2x128xf32>
      %c0_12 = arith.constant 0 : index
      %c0_13 = arith.constant 0 : index
      %13 = vector.load %arg5[%c0_12, %c0_13] : memref<1x128xf32, #tpu.memory_space<vmem>>, vector<1x128xf32>
      %14 = vector.broadcast %13 : vector<1x128xf32> to vector<2x128xf32>
      %15 = arith.addf %12, %14 : vector<2x128xf32>
      %c0_14 = arith.constant 0 : index
      %c0_15 = arith.constant 0 : index
      %16 = vector.load %arg6[%c0_14, %c0_15] : memref<2x128xf32, #tpu.memory_space<vmem>>, vector<2x128xf32>
      tpu.vector_store %arg6[%c0_14, %c0_15], %15 {strides = array<i32>} : memref<2x128xf32, #tpu.memory_space<vmem>>, vector<2x128xf32>,
    } else {
    }
    return
  }
  func.func @transform_0(%arg0: i32, %arg1: i32, %arg2: i32) -> (i32, i32) {
    %c0_i32 = arith.constant 0 : i32
    return %arg0, %arg2 : i32, i32
  }
  func.func @transform_1(%arg0: i32, %arg1: i32, %arg2: i32) -> (i32, i32) {
    %c0_i32 = arith.constant 0 : i32
    return %arg2, %arg1 : i32, i32
  }
  func.func @transform_2(%arg0: i32, %arg1: i32, %arg2: i32) -> (i32, i32) {
    %c0_i32 = arith.constant 0 : i32
    %c0_i32_0 = arith.constant 0 : i32
    return %c0_i32, %arg1 : i32, i32
  }
  func.func @transform_3(%arg0: i32, %arg1: i32, %arg2: i32) -> (i32, i32) {
    %c0_i32 = arith.constant 0 : i32
    return %arg0, %arg1 : i32, i32
  }
}

</mosaic_0001>

<bundles_post_ra>
// kernel: bert_encoder_forward.21
= control target key start
LH: loop header
LB: loop body
LE: loop exit
PB: predicated region body
PF: predicated region fallthrough
CT: control target
= control target key end

     0   :  { %vm18_vm0 = vcmask 261120   ;;  %v164_v3 = vmov 0.0   ;;  %s220_s1 = inlined_call_operand.vmem [shape: f32[32,32], index: 1, kind: input, shape index: {}]   ;;  %s221_s0 = inlined_call_operand.vmem [shape: f32[16,32], index: 0, kind: input, shape index: {}]   ;;  %s222_s2 = inlined_call_operand.vmem [shape: f32[1,32], index: 2, kind: input, shape index: {}]   ;;  %s223_s3 = inlined_call_operand.vmem [shape: f32[16,32], index: 3, kind: output, shape index: {}]  }
   0x1   :  { %v25_v0 = vld [vmem:[%s220_s1] sm:$0xff]  ;;  %v26_v1 = vld [vmem:[%s220_s1 + $0x8] sm:$0xff]  ;;  %v27_v2 = vld [vmem:[%s220_s1 + $0x10] sm:$0xff]  ;;  %20 = vst.msk [vmem:[#allocation2 + $0x8] sm:$0xff] %vm18_vm0, %v164_v3 }
   0x2   :  { %19 = vst.msk [vmem:[#allocation2] sm:$0xff] %vm18_vm0, %v164_v3  ;;  %v155_v4 = vpack.c.bf16 %v26_v1, %v25_v0  ;;  %v28_v5 = vld [vmem:[%s220_s1 + $0x18] sm:$0xff]  ;;  %v23_v6 = vld [vmem:[%s221_s0] sm:$0xff]  ;;  %v24_v8 = vld [vmem:[%s221_s0 + $0x8] sm:$0xff] }
   0x3   :  { %v159_v7 = vpack.c.bf16 %v28_v5, %v27_v2  ;;  %152 = vmatprep.mubr.msk.f32.mxu0 %vm18_vm0, %v23_v6  ;;  %v137_v15 = vld [vmem:[%s222_s2] ss:$0 sm:$0xff] }
   0x4   :  { %156 = vmatprep.subr.bf16.mxu0 %v155_v4 }
   0x5   :  { %158 = vmatpush3.bf16.msra.mxu0 %v155_v4 }
   0x6   :  { %160 = vmatprep.subr.bf16.mxu0 %v159_v7 }
   0x8   :  { %v22_v9 = vld [vmem:[#allocation2 + $0x8] sm:$0xff] }
   0x9   :  { %162 = vmatpush3.bf16.msra.mxu0 %v159_v7  ;;  %v21_v10 = vld [vmem:[#allocation2] sm:$0xff] }
   0xc   :  { %153 = vmatmul.mubr.msk.f32.vlgmr.msra.gmra.mrb[0].mxu0 %vm18_vm0, %v24_v8 }
  0xdf   :  { %v154_v11 = vpop.f32.mrb[0].mxu0 }
  0xe0   :  { %v112_v12 = vadd.f32 %v154_v11, %v22_v9  ;;  %v102_v13 = vpop.f32.mrb[1].mxu0 }
  0xe1   :  { %v111_v14 = vadd.f32 %v102_v13, %v21_v10 }
  0xe2   :  { %114 = vst.msk [vmem:[#allocation2 + $0x8] sm:$0xff] %vm18_vm0, %v112_v12 }
  0xe3   :  { %113 = vst.msk [vmem:[#allocation2] sm:$0xff] %vm18_vm0, %v111_v14 }
  0xe9   :  { %v119_v16 = vld [vmem:[#allocation2 + $0x8] sm:$0xff] }
  0xea   :  { %v128_v17 = vadd.f32 %v137_v15, %v119_v16  ;;  %v118_v18 = vld [vmem:[#allocation2] sm:$0xff] }
  0xeb   :  { %v127_v19 = vadd.f32 %v137_v15, %v118_v18 }
  0xec   :  { %130 = vst.msk [vmem:[%s223_s3 + $0x8] sm:$0xff] %vm18_vm0, %v128_v17 }
  0xed   :  { %129 = vst.msk [vmem:[%s223_s3] sm:$0xff] %vm18_vm0, %v127_v19 }

// kernel: bert_encoder_forward.19
= control target key start
LH: loop header
LB: loop body
LE: loop exit
PB: predicated region body
PF: predicated region fallthrough
CT: control target
= control target key end

     0   :  { %vm29_vm0 = vcmask 261120   ;;  %vm18_vm1 = vcmask 785408   ;;  %v165_v3 = vmov 0.0   ;;  %s221_s1 = inlined_call_operand.vmem [shape: f32[32,96], index: 1, kind: input, shape index: {}]   ;;  %s222_s0 = inlined_call_operand.vmem [shape: f32[16,32], index: 0, kind: input, shape index: {}]   ;;  %s223_s2 = inlined_call_operand.vmem [shape: f32[1,96], index: 2, kind: input, shape index: {}]   ;;  %s224_s3 = inlined_call_operand.vmem [shape: f32[16,96], index: 3, kind: output, shape index: {}]  }
   0x1   :  { %v25_v0 = vld [vmem:[%s221_s1] sm:$0xff]  ;;  %v26_v1 = vld [vmem:[%s221_s1 + $0x8] sm:$0xff]  ;;  %v27_v2 = vld [vmem:[%s221_s1 + $0x10] sm:$0xff]  ;;  %20 = vst.msk [vmem:[#allocation2 + $0x8] sm:$0xff] %vm18_vm1, %v165_v3 }
   0x2   :  { %19 = vst.msk [vmem:[#allocation2] sm:$0xff] %vm18_vm1, %v165_v3  ;;  %v156_v4 = vpack.c.bf16 %v26_v1, %v25_v0  ;;  %v28_v5 = vld [vmem:[%s221_s1 + $0x18] sm:$0xff]  ;;  %v23_v6 = vld [vmem:[%s222_s0] sm:$0xff]  ;;  %v24_v8 = vld [vmem:[%s222_s0 + $0x8] sm:$0xff] }
   0x3   :  { %v160_v7 = vpack.c.bf16 %v28_v5, %v27_v2  ;;  %153 = vmatprep.mubr.msk.f32.mxu0 %vm29_vm0, %v23_v6  ;;  %v138_v15 = vld [vmem:[%s223_s2] ss:$0 sm:$0xff] }
   0x4   :  { %157 = vmatprep.subr.bf16.mxu0 %v156_v4 }
   0x5   :  { %159 = vmatpush3.bf16.msra.mxu0 %v156_v4 }
   0x6   :  { %161 = vmatprep.subr.bf16.mxu0 %v160_v7 }
   0x8   :  { %v22_v9 = vld [vmem:[#allocation2 + $0x8] sm:$0xff] }
   0x9   :  { %163 = vmatpush3.bf16.msra.mxu0 %v160_v7  ;;  %v21_v10 = vld [vmem:[#allocation2] sm:$0xff] }
   0xc   :  { %154 = vmatmul.mubr.msk.f32.vlgmr.msra.gmra.mrb[0].mxu0 %vm29_vm0, %v24_v8 }
  0xdf   :  { %v155_v11 = vpop.f32.mrb[0].mxu0 }
  0xe0   :  { %v112_v12 = vadd.f32 %v155_v11, %v22_v9  ;;  %v102_v13 = vpop.f32.mrb[1].mxu0 }
  0xe1   :  { %v111_v14 = vadd.f32 %v102_v13, %v21_v10 }
  0xe2   :  { %115 = vst.msk [vmem:[#allocation2 + $0x8] sm:$0xff] %vm18_vm1, %v112_v12 }
  0xe3   :  { %114 = vst.msk [vmem:[#allocation2] sm:$0xff] %vm18_vm1, %v111_v14 }
  0xe9   :  { %v120_v16 = vld [vmem:[#allocation2 + $0x8] sm:$0xff] }
  0xea   :  { %v129_v17 = vadd.f32 %v138_v15, %v120_v16  ;;  %v119_v18 = vld [vmem:[#allocation2] sm:$0xff] }
  0xeb   :  { %v128_v19 = vadd.f32 %v138_v15, %v119_v18 }
  0xec   :  { %131 = vst.msk [vmem:[%s224_s3 + $0x8] sm:$0xff] %vm18_vm1, %v129_v17 }
  0xed   :  { %130 = vst.msk [vmem:[%s224_s3] sm:$0xff] %vm18_vm1, %v128_v19 }

// kernel: bert_encoder_forward.18
= control target key start
LH: loop header
LB: loop body
LE: loop exit
PB: predicated region body
PF: predicated region fallthrough
CT: control target
= control target key end

     0   :  { %vm16_vm0 = vcmask 261120   ;;  %s118_s0 = inlined_call_operand.vmem [shape: f32[16,32], index: 0, kind: input, shape index: {}]   ;;  %s119_s1 = inlined_call_operand.vmem [shape: f32[1,32], index: 1, kind: input, shape index: {}]   ;;  %s120_s2 = inlined_call_operand.vmem [shape: f32[1,32], index: 2, kind: input, shape index: {}]   ;;  %s121_s3 = inlined_call_operand.vmem [shape: f32[16,32], index: 3, kind: output, shape index: {}]  }
   0x1   :  { %v14_v0 = vld [vmem:[%s118_s0] sm:$0xff]  ;;  %v15_v1 = vld [vmem:[%s118_s0 + $0x8] sm:$0xff] }
   0x2   :  { %v17_v2 = vsel %vm16_vm0, %v14_v0, 0.0  ;;  %v20_v3 = vsel %vm16_vm0, %v15_v1, 0.0  ;;  %v68_v21 = vld [vmem:[%s119_s1] ss:$0 sm:$0xff] }
   0x3   :  { %18 = vadd.xlane.f32.xlu0 %v17_v2  ;;  %v69_v23 = vld [vmem:[%s120_s2] ss:$0 sm:$0xff] }
   0x7   :  { %21 = vadd.xlane.f32.xlu0 %v20_v3 }
  0x90   :  { %v19_v4 = vpop.xlane.xlu0 %18 }
  0x91   :  { %v24_v5 = vmul.f32 0.03125, %v19_v4 }
  0x93   :  { %v26_v6 = vsub.f32 %v14_v0, %v24_v5 }
  0x94   :  { %v22_v7 = vpop.xlane.xlu0 %21 }
  0x95   :  { %v25_v8 = vmul.f32 0.03125, %v22_v7  ;;  %v28_v9 = vmul.f32 %v26_v6, %v26_v6 }
  0x97   :  { %v27_v10 = vsub.f32 %v15_v1, %v25_v8  ;;  %v30_v11 = vsel %vm16_vm0, %v28_v9, 0.0 }
  0x98   :  { %31 = vadd.xlane.f32.xlu1 %v30_v11 }
  0x99   :  { %v29_v12 = vmul.f32 %v27_v10, %v27_v10 }
  0x9b   :  { %v33_v13 = vsel %vm16_vm0, %v29_v12, 0.0 }
  0x9c   :  { %34 = vadd.xlane.f32.xlu1 %v33_v13 }
 0x125   :  { %v32_v14 = vpop.xlane.xlu1 %31 }
 0x126   :  { %v36_v15 = vmul.f32 0.03125, %v32_v14 }
 0x128   :  { %v38_v16 = vadd.f32 1e-12, %v36_v15 }
 0x129   :  { %v35_v17 = vpop.xlane.xlu1 %34 }
 0x12a   :  { %70 = vrsqrt.f32 %v38_v16  ;;  %v37_v18 = vmul.f32 0.03125, %v35_v17 }
 0x12c   :  { %v39_v19 = vadd.f32 1e-12, %v37_v18 }
 0x12e   :  { %72 = vrsqrt.f32 %v39_v19 }
 0x134   :  { %v71_v20 = vpop.eup %70 }
 0x135   :  { %v42_v22 = vmul.f32 %v71_v20, %v26_v6 }
 0x137   :  { %v51_v24 = vmul.f32 %v68_v21, %v42_v22 }
 0x138   :  { %v73_v25 = vpop.eup %72 }
 0x139   :  { %v60_v26 = vadd.f32 %v69_v23, %v51_v24  ;;  %v43_v27 = vmul.f32 %v73_v25, %v27_v10 }
 0x13b   :  { %62 = vst.msk [vmem:[%s121_s3] sm:$0xff] %vm16_vm0, %v60_v26  ;;  %v52_v28 = vmul.f32 %v68_v21, %v43_v27 }
 0x13d   :  { %v61_v29 = vadd.f32 %v69_v23, %v52_v28 }
 0x13f   :  { %63 = vst.msk [vmem:[%s121_s3 + $0x8] sm:$0xff] %vm16_vm0, %v61_v29 }

// kernel: bert_encoder_forward.20
= control target key start
LH: loop header
LB: loop body
LE: loop exit
PB: predicated region body
PF: predicated region fallthrough
CT: control target
= control target key end

     0   :  { %s888_s15 = smov 0   ;;  %s890_s16 = smov 0   ;;  %s954_s0 = inlined_call_operand.vmem [shape: f32[16,32], index: 0, kind: input, shape index: {}]   ;;  %s955_s1 = inlined_call_operand.vmem [shape: f32[16,32], index: 1, kind: input, shape index: {}]   ;;  %s956_s2 = inlined_call_operand.vmem [shape: f32[16,32], index: 2, kind: input, shape index: {}]   ;;  %s957_s3 = inlined_call_operand.vmem [shape: f32[2,1,8], index: 3, kind: input, shape index: {}]   ;;  %s958_s4 = inlined_call_operand.vmem [shape: f32[16,32], index: 4, kind: output, shape index: {}]  }
   0x1   :  { %s892_s17 = smov 0  }
   0x2 LB: > { %s26_s18 = sadd.s32 1, %s853_s16  ;;  %p757_p0 = scmp.ge.s32.totalorder %s857_s17, 1  ;;  %s857_s17 = sphi %s892_s17, %s14_s17   ;;  %s853_s16 = sphi %s890_s16, %s960_s16   ;;  %s849_s15 = sphi %s888_s15, %s959_s15  }
   0x3   : > { %p28_p1 = scmp.ge.s32.totalorder %s26_s18, 2  ;;  %p216_p2 = scmp.lt.s32.totalorder %s857_s17, 3 }
   0x5   : > { %s962_s18 = smov (%p28_p1, %s26_s18), 0  ;;  %p217_p3 = pnand %p757_p0, %p216_p2 }
   0x6   : > { %p263_p4 = scmp.lt.s32.totalorder (!%p217_p3), %s849_s15, 1  ;;  %v859_v0 = vmov (!%p217_p3), 0.0   ;;  %vm860_vm0 = vmmov (!%p217_p3), 0   ;;  %vm305_vm1 = vcmask (!%p217_p3), 130048   ;;  %vm382_vm2 = vcmask (!%p217_p3), 64512   ;;  %s861_s29 = smov (!%p217_p3), 112  }
   0x7   : > { %220 = sbr.rel (%p217_p3) target bundleno = 1410 (0x582), region = 36  ;;  %779 = vmatprep.subr.mxu0 (!%p217_p3), %v859_v0  ;;  %781 = vmatprep.mubr.msk.f32.mxu0 (!%p217_p3), %vm860_vm0, %v859_v0  ;;  %s862_s7 = smov (!%p217_p3), 16   ;;  %vm638_vm3 = vcmask (!%p217_p3), 261120  }
   0x8   : > { %784 = vmatprep.subr.mxu1 (!%p217_p3), %v859_v0  ;;  %786 = vmatprep.mubr.msk.f32.mxu1 (!%p217_p3), %vm860_vm0, %v859_v0 }
   0xe   : > { %s964_s15 = smov (!%p263_p4, %s849_s15), 1 }
   0xf   : > { %s908_s19 = sshll.u32 %s964_s15, 3  ;;  %s286_s28 = scalar_lea.vmem %s957_s3, %s964_s15 }
  0x10   : > { %s276_s22 = scalar_lea.vmem %s955_s1, %s908_s19  ;;  %s269_s25 = scalar_lea.vmem %s954_s0, %s908_s19  ;;  %v762_v4 = vld [vmem:[%s286_s28] ss:$0 sm:$0xff] }
  0x11   : > { %v297_v1 = vld [vmem:[%s276_s22] sm:$0xff]  ;;  %s283_s6 = scalar_lea.vmem %s956_s2, %s908_s19  ;;  %s293_s10 = scalar_lea.vmem %s958_s4, %s908_s19 }
  0x12   : > { %v295_v2 = vld [vmem:[%s269_s25] sm:$0xff]  ;;  %780 = vmatpush3.xpose.msk.msra.mxu0 %vm305_vm1, %v297_v1  ;;  %469 = vrot.lane.b32.xlu1 %v297_v1, %s861_s29 }
  0x13   : > { %v296_v3 = vmul.f32 0.25, %v295_v2  ;;  %794 = vmatprep.subr.mxu0 %v859_v0  ;;  %v298_v14 = vld [vmem:[%s283_s6] sm:$0xff] }
  0x14   : > { %785 = vmatpush3.msra.mxu1 %v298_v14 }
  0x15   : > { %782 = vmatmul.mubr.msk.f32.vlgmr.msra.gmra.mrb[0].mxu0 %vm305_vm1, %v296_v3  ;;  %789 = vmatprep.subr.mxu1 %v859_v0 }
  0x16   : > { %796 = vmatprep.mubr.msk.f32.mxu0 %vm860_vm0, %v859_v0  ;;  %467 = vrot.lane.b32.xlu1 %v296_v3, %s861_s29 }
  0x84   : > { %v470_v16 = vpop.permute.xlu1 %469 }
  0x88   : > { %v468_v19 = vpop.permute.xlu1 %467 }
  0xe8   : > { %v378_v5 = vpop.f32.mrb[0].mxu0 }
  0xe9   : > { %v379_v6 = vadd.f32 %v762_v4, %v378_v5  ;;  %v783_v7 = vpop.f32.mrb[1].mxu0 }
  0xeb   : > { %v383_v8 = vsel %vm382_vm2, %v379_v6, -inf }
  0xec   : > { %384 = vmax.xlane.f32.xlu0 %v383_v8 }
 0x179   : > { %v385_v9 = vpop.xlane.xlu0 %384 }
 0x17a   : > { %v386_v10 = vsub.f32 %v379_v6, %v385_v9 }
 0x17c   : > { %v387_v11 = vmul.f32 1.442695, %v386_v10 }
 0x17e   : > { %827 = vpow2.f32 %v387_v11 }
 0x188   : > { %v828_v12 = vpop.eup %827 }
 0x189   : > { %v389_v13 = vsel %vm382_vm2, %v828_v12, 0.0 }
 0x18a   : > { %390 = vadd.xlane.f32.xlu0 %v389_v13 }
 0x217   : > { %v391_v15 = vpop.xlane.xlu0 %390 }
 0x218   : > { %829 = vrcp.f32 %v391_v15 }
 0x222   : > { %v830_v17 = vpop.eup %829 }
 0x223   : > { %v393_v18 = vmul.f32 %v830_v17, %v828_v12 }
 0x225   : > { %787 = vmatmul.mubr.msk.f32.vlgmr.msra.gmra.mrb[0].mxu1 %vm382_vm2, %v393_v18 }
 0x226   : > { %790 = vmatpush3.xpose.msk.msra.mxu1 %vm305_vm1, %v470_v16  ;;  %791 = vmatprep.mubr.msk.f32.mxu1 %vm860_vm0, %v859_v0 }
 0x229   : > { %792 = vmatmul.mubr.msk.f32.vlgmr.msra.gmra.mrb[2].mxu1 %vm305_vm1, %v468_v19 }
 0x2f8   : > { %v463_v20 = vpop.f32.mrb[0].mxu1 }
 0x2f9   : > { %v788_v21 = vpop.f32.mrb[1].mxu1 }
 0x2fc   : > { %v541_v22 = vpop.f32.mrb[2].mxu1 }
 0x2fd   : > { %v542_v23 = vadd.f32 %v762_v4, %v541_v22  ;;  %v793_v24 = vpop.f32.mrb[3].mxu1 }
 0x2ff   : > { %v545_v25 = vsel %vm382_vm2, %v542_v23, -inf }
 0x300   : > { %546 = vmax.xlane.f32.xlu0 %v545_v25 }
 0x316   : > { %557 = vrot.lane.b32.xlu0 %v298_v14, %s861_s29 }
 0x38d   : > { %v547_v26 = vpop.xlane.xlu0 %546 }
 0x38e   : > { %v548_v27 = vsub.f32 %v542_v23, %v547_v26 }
 0x390   : > { %v549_v28 = vmul.f32 1.442695, %v548_v27 }
 0x391   : > { %v558_v31 = vpop.permute.xlu0 %557 }
 0x392   : > { %831 = vpow2.f32 %v549_v28  ;;  %795 = vmatpush3.msra.mxu0 %v558_v31 }
 0x39c   : > { %v832_v29 = vpop.eup %831 }
 0x39d   : > { %v551_v30 = vsel %vm382_vm2, %v832_v29, 0.0 }
 0x39e   : > { %552 = vadd.xlane.f32.xlu1 %v551_v30 }
 0x42b   : > { %v553_v32 = vpop.xlane.xlu1 %552 }
 0x42c   : > { %833 = vrcp.f32 %v553_v32 }
 0x436   : > { %v834_v33 = vpop.eup %833 }
 0x437   : > { %v555_v34 = vmul.f32 %v834_v33, %v832_v29 }
 0x439   : > { %797 = vmatmul.mubr.msk.f32.vlgmr.msra.gmra.mrb[2].mxu0 %vm382_vm2, %v555_v34 }
 0x50c   : > { %v629_v35 = vpop.f32.mrb[2].mxu0 }
 0x50d   : > { %634 = vrot.lane.b32.xlu0 %v629_v35, %s862_s7  ;;  %v798_v36 = vpop.f32.mrb[3].mxu0 }
 0x57f   : > { %v635_v37 = vpop.permute.xlu0 %634 }
 0x580   : > { %v637_v38 = vsel %vm305_vm1, %v463_v20, %v635_v37 }
 0x581   : > { %639 = vst.msk [vmem:[%s293_s10] sm:$0xff] %vm638_vm3, %v637_v38 }
 0x582 PF: > { %s14_s17 = sadd.s32 1, %s857_s17   ;;  %s959_s15 = smov %s853_s16 }
 0x583   : > { %p11_p5 = scmp.ge.s32.totalorder %s14_s17, 4   ;;  %s960_s16 = smov %s962_s18 }
 0x585   :  { %13 = sbr.rel (!%p11_p5) target bundleno = 2 (0x2), region = 75 }

// kernel: bert_encoder_forward.23
= control target key start
LH: loop header
LB: loop body
LE: loop exit
PB: predicated region body
PF: predicated region fallthrough
CT: control target
= control target key end

     0   :  { %vm29_vm0 = vcmask 261120   ;;  %vm18_vm1 = vcmask 523264   ;;  %v187_v3 = vmov 0.0   ;;  %s243_s1 = inlined_call_operand.vmem [shape: f32[32,64], index: 1, kind: input, shape index: {}]   ;;  %s244_s0 = inlined_call_operand.vmem [shape: f32[16,32], index: 0, kind: input, shape index: {}]   ;;  %s245_s2 = inlined_call_operand.vmem [shape: f32[1,64], index: 2, kind: input, shape index: {}]   ;;  %s246_s3 = inlined_call_operand.vmem [shape: f32[16,64], index: 3, kind: output, shape index: {}]  }
   0x1   :  { %v25_v0 = vld [vmem:[%s243_s1] sm:$0xff]  ;;  %v26_v1 = vld [vmem:[%s243_s1 + $0x8] sm:$0xff]  ;;  %v27_v2 = vld [vmem:[%s243_s1 + $0x10] sm:$0xff]  ;;  %20 = vst.msk [vmem:[#allocation2 + $0x8] sm:$0xff] %vm18_vm1, %v187_v3 }
   0x2   :  { %19 = vst.msk [vmem:[#allocation2] sm:$0xff] %vm18_vm1, %v187_v3  ;;  %v174_v4 = vpack.c.bf16 %v26_v1, %v25_v0  ;;  %v28_v5 = vld [vmem:[%s243_s1 + $0x18] sm:$0xff]  ;;  %v23_v6 = vld [vmem:[%s244_s0] sm:$0xff]  ;;  %v24_v8 = vld [vmem:[%s244_s0 + $0x8] sm:$0xff] }
   0x3   :  { %v178_v7 = vpack.c.bf16 %v28_v5, %v27_v2  ;;  %171 = vmatprep.mubr.msk.f32.mxu0 %vm29_vm0, %v23_v6  ;;  %v156_v15 = vld [vmem:[%s245_s2] ss:$0 sm:$0xff] }
   0x4   :  { %175 = vmatprep.subr.bf16.mxu0 %v174_v4 }
   0x5   :  { %177 = vmatpush3.bf16.msra.mxu0 %v174_v4 }
   0x6   :  { %179 = vmatprep.subr.bf16.mxu0 %v178_v7 }
   0x8   :  { %v22_v9 = vld [vmem:[#allocation2 + $0x8] sm:$0xff] }
   0x9   :  { %181 = vmatpush3.bf16.msra.mxu0 %v178_v7  ;;  %v21_v10 = vld [vmem:[#allocation2] sm:$0xff] }
   0xc   :  { %172 = vmatmul.mubr.msk.f32.vlgmr.msra.gmra.mrb[0].mxu0 %vm29_vm0, %v24_v8 }
  0xdf   :  { %v173_v11 = vpop.f32.mrb[0].mxu0 }
  0xe0   :  { %v112_v12 = vadd.f32 %v173_v11, %v22_v9  ;;  %v102_v13 = vpop.f32.mrb[1].mxu0 }
  0xe1   :  { %v111_v14 = vadd.f32 %v102_v13, %v21_v10 }
  0xe2   :  { %115 = vst.msk [vmem:[#allocation2 + $0x8] sm:$0xff] %vm18_vm1, %v112_v12 }
  0xe3   :  { %114 = vst.msk [vmem:[#allocation2] sm:$0xff] %vm18_vm1, %v111_v14 }
  0xe9   :  { %v120_v16 = vld [vmem:[#allocation2 + $0x8] sm:$0xff] }
  0xea   :  { %v129_v17 = vadd.f32 %v156_v15, %v120_v16  ;;  %v119_v18 = vld [vmem:[#allocation2] sm:$0xff] }
  0xeb   :  { %v128_v19 = vadd.f32 %v156_v15, %v119_v18 }
  0xec   :  { %v131_v20 = vmul.f32 %v129_v17, %v129_v17 }
  0xed   :  { %v130_v21 = vmul.f32 %v128_v19, %v128_v19 }
  0xee   :  { %v133_v22 = vmul.f32 %v131_v20, %v129_v17 }
  0xef   :  { %v132_v23 = vmul.f32 %v130_v21, %v128_v19 }
  0xf0   :  { %v135_v24 = vmul.f32 0.044715, %v133_v22 }
  0xf1   :  { %v134_v25 = vmul.f32 0.044715, %v132_v23 }
  0xf2   :  { %v137_v26 = vadd.f32 %v135_v24, %v129_v17 }
  0xf3   :  { %v136_v27 = vadd.f32 %v134_v25, %v128_v19 }
  0xf4   :  { %v139_v28 = vmul.f32 0.7978846, %v137_v26 }
  0xf5   :  { %v138_v29 = vmul.f32 0.7978846, %v136_v27 }
  0xf6   :  { %183 = vtanh.f32 %v139_v28 }
  0xf7   :  { %185 = vtanh.f32 %v138_v29 }
 0x100   :  { %v184_v30 = vpop.eup %183 }
 0x101   :  { %v186_v31 = vpop.eup %185  ;;  %v143_v32 = vadd.f32 1.0, %v184_v30 }
 0x102   :  { %v142_v33 = vadd.f32 1.0, %v186_v31 }
 0x103   :  { %v145_v34 = vmul.f32 0.5, %v143_v32 }
 0x104   :  { %v144_v35 = vmul.f32 0.5, %v142_v33 }
 0x105   :  { %v147_v36 = vmul.f32 %v145_v34, %v129_v17 }
 0x106   :  { %v146_v37 = vmul.f32 %v144_v35, %v128_v19 }
 0x107   :  { %149 = vst.msk [vmem:[%s246_s3 + $0x8] sm:$0xff] %vm18_vm1, %v147_v36 }
 0x108   :  { %148 = vst.msk [vmem:[%s246_s3] sm:$0xff] %vm18_vm1, %v146_v37 }

// kernel: bert_encoder_forward.22
= control target key start
LH: loop header
LB: loop body
LE: loop exit
PB: predicated region body
PF: predicated region fallthrough
CT: control target
= control target key end

     0   :  { %vm23_vm0 = vcmask 261120   ;;  %s136_s0 = inlined_call_operand.vmem [shape: f32[16,32], index: 0, kind: input, shape index: {}]   ;;  %s137_s1 = inlined_call_operand.vmem [shape: f32[16,32], index: 1, kind: input, shape index: {}]   ;;  %s138_s2 = inlined_call_operand.vmem [shape: f32[1,32], index: 2, kind: input, shape index: {}]   ;;  %s139_s3 = inlined_call_operand.vmem [shape: f32[1,32], index: 3, kind: input, shape index: {}]   ;;  %s140_s4 = inlined_call_operand.vmem [shape: f32[16,32], index: 4, kind: output, shape index: {}]  }
   0x1   :  { %v17_v0 = vld [vmem:[%s136_s0] sm:$0xff]  ;;  %v18_v2 = vld [vmem:[%s136_s0 + $0x8] sm:$0xff] }
   0x2   :  { %v19_v1 = vld [vmem:[%s137_s1] sm:$0xff]  ;;  %v20_v4 = vld [vmem:[%s137_s1 + $0x8] sm:$0xff] }
   0x3   :  { %v21_v3 = vadd.f32 %v19_v1, %v17_v0  ;;  %v22_v5 = vadd.f32 %v20_v4, %v18_v2  ;;  %v75_v25 = vld [vmem:[%s138_s2] ss:$0 sm:$0xff] }
   0x4   :  { %v76_v27 = vld [vmem:[%s139_s3] ss:$0 sm:$0xff] }
   0x5   :  { %v24_v6 = vsel %vm23_vm0, %v21_v3, 0.0  ;;  %v27_v7 = vsel %vm23_vm0, %v22_v5, 0.0 }
   0x6   :  { %25 = vadd.xlane.f32.xlu0 %v24_v6 }
   0xa   :  { %28 = vadd.xlane.f32.xlu0 %v27_v7 }
  0x93   :  { %v26_v8 = vpop.xlane.xlu0 %25 }
  0x94   :  { %v31_v9 = vmul.f32 0.03125, %v26_v8 }
  0x96   :  { %v33_v10 = vsub.f32 %v21_v3, %v31_v9 }
  0x97   :  { %v29_v11 = vpop.xlane.xlu0 %28 }
  0x98   :  { %v32_v12 = vmul.f32 0.03125, %v29_v11  ;;  %v35_v13 = vmul.f32 %v33_v10, %v33_v10 }
  0x9a   :  { %v34_v14 = vsub.f32 %v22_v5, %v32_v12  ;;  %v37_v15 = vsel %vm23_vm0, %v35_v13, 0.0 }
  0x9b   :  { %38 = vadd.xlane.f32.xlu1 %v37_v15 }
  0x9c   :  { %v36_v16 = vmul.f32 %v34_v14, %v34_v14 }
  0x9e   :  { %v40_v17 = vsel %vm23_vm0, %v36_v16, 0.0 }
  0x9f   :  { %41 = vadd.xlane.f32.xlu1 %v40_v17 }
 0x128   :  { %v39_v18 = vpop.xlane.xlu1 %38 }
 0x129   :  { %v43_v19 = vmul.f32 0.03125, %v39_v18 }
 0x12b   :  { %v45_v20 = vadd.f32 1e-12, %v43_v19 }
 0x12c   :  { %v42_v21 = vpop.xlane.xlu1 %41 }
 0x12d   :  { %77 = vrsqrt.f32 %v45_v20  ;;  %v44_v22 = vmul.f32 0.03125, %v42_v21 }
 0x12f   :  { %v46_v23 = vadd.f32 1e-12, %v44_v22 }
 0x131   :  { %79 = vrsqrt.f32 %v46_v23 }
 0x137   :  { %v78_v24 = vpop.eup %77 }
 0x138   :  { %v49_v26 = vmul.f32 %v78_v24, %v33_v10 }
 0x13a   :  { %v58_v28 = vmul.f32 %v75_v25, %v49_v26 }
 0x13b   :  { %v80_v29 = vpop.eup %79 }
 0x13c   :  { %v67_v30 = vadd.f32 %v76_v27, %v58_v28  ;;  %v50_v31 = vmul.f32 %v80_v29, %v34_v14 }
 0x13e   :  { %69 = vst.msk [vmem:[%s140_s4] sm:$0xff] %vm23_vm0, %v67_v30  ;;  %v59_v32 = vmul.f32 %v75_v25, %v50_v31 }
 0x140   :  { %v68_v33 = vadd.f32 %v76_v27, %v59_v32 }
 0x142   :  { %70 = vst.msk [vmem:[%s140_s4 + $0x8] sm:$0xff] %vm23_vm0, %v68_v33 }

// kernel: bert_encoder_forward.24
= control target key start
LH: loop header
LB: loop body
LE: loop exit
PB: predicated region body
PF: predicated region fallthrough
CT: control target
= control target key end

     0   :  { %vm18_vm0 = vcmask 261120   ;;  %vm33_vm1 = vcmask 523264   ;;  %v189_v3 = vmov 0.0   ;;  %s257_s1 = inlined_call_operand.vmem [shape: f32[64,32], index: 1, kind: input, shape index: {}]   ;;  %s258_s0 = inlined_call_operand.vmem [shape: f32[16,64], index: 0, kind: input, shape index: {}]   ;;  %s259_s2 = inlined_call_operand.vmem [shape: f32[1,32], index: 2, kind: input, shape index: {}]   ;;  %s260_s3 = inlined_call_operand.vmem [shape: f32[16,32], index: 3, kind: output, shape index: {}]  }
   0x1   :  { %v25_v0 = vld [vmem:[%s257_s1] sm:$0xff]  ;;  %v26_v1 = vld [vmem:[%s257_s1 + $0x8] sm:$0xff]  ;;  %v27_v2 = vld [vmem:[%s257_s1 + $0x10] sm:$0xff]  ;;  %20 = vst.msk [vmem:[#allocation2 + $0x8] sm:$0xff] %vm18_vm0, %v189_v3 }
   0x2   :  { %19 = vst.msk [vmem:[#allocation2] sm:$0xff] %vm18_vm0, %v189_v3  ;;  %v172_v4 = vpack.c.bf16 %v26_v1, %v25_v0  ;;  %v28_v5 = vld [vmem:[%s257_s1 + $0x18] sm:$0xff]  ;;  %v29_v7 = vld [vmem:[%s257_s1 + $0x20] sm:$0xff]  ;;  %v30_v8 = vld [vmem:[%s257_s1 + $0x28] sm:$0xff] }
   0x3   :  { %v176_v6 = vpack.c.bf16 %v28_v5, %v27_v2  ;;  %v23_v9 = vld [vmem:[%s258_s0] sm:$0xff]  ;;  %v180_v10 = vpack.c.bf16 %v30_v8, %v29_v7  ;;  %v31_v11 = vld [vmem:[%s257_s1 + $0x30] sm:$0xff]  ;;  %v32_v12 = vld [vmem:[%s257_s1 + $0x38] sm:$0xff] }
   0x4   :  { %173 = vmatprep.subr.bf16.mxu0 %v172_v4  ;;  %169 = vmatprep.mubr.msk.f32.mxu0 %vm33_vm1, %v23_v9  ;;  %v184_v13 = vpack.c.bf16 %v32_v12, %v31_v11  ;;  %v24_v14 = vld [vmem:[%s258_s0 + $0x8] sm:$0xff]  ;;  %v142_v21 = vld [vmem:[%s259_s2] ss:$0 sm:$0xff] }
   0x5   :  { %175 = vmatpush3.bf16.msra.mxu0 %v172_v4 }
   0x6   :  { %177 = vmatprep.subr.bf16.mxu0 %v176_v6 }
   0x8   :  { %v22_v15 = vld [vmem:[#allocation2 + $0x8] sm:$0xff] }
   0x9   :  { %179 = vmatpush3.bf16.msra.mxu0 %v176_v6  ;;  %v21_v16 = vld [vmem:[#allocation2] sm:$0xff] }
   0xa   :  { %181 = vmatprep.subr.bf16.mxu0 %v180_v10 }
   0xd   :  { %183 = vmatpush3.bf16.msra.mxu0 %v180_v10 }
   0xe   :  { %185 = vmatprep.subr.bf16.mxu0 %v184_v13 }
  0x11   :  { %187 = vmatpush3.bf16.msra.mxu0 %v184_v13 }
  0x14   :  { %170 = vmatmul.mubr.msk.f32.vlgmr.msra.gmra.mrb[0].mxu0 %vm33_vm1, %v24_v14 }
  0xe7   :  { %v171_v17 = vpop.f32.mrb[0].mxu0 }
  0xe8   :  { %v116_v18 = vadd.f32 %v171_v17, %v22_v15  ;;  %v106_v19 = vpop.f32.mrb[1].mxu0 }
  0xe9   :  { %v115_v20 = vadd.f32 %v106_v19, %v21_v16 }
  0xea   :  { %119 = vst.msk [vmem:[#allocation2 + $0x8] sm:$0xff] %vm18_vm0, %v116_v18 }
  0xeb   :  { %118 = vst.msk [vmem:[#allocation2] sm:$0xff] %vm18_vm0, %v115_v20 }
  0xf1   :  { %v124_v22 = vld [vmem:[#allocation2 + $0x8] sm:$0xff] }
  0xf2   :  { %v133_v23 = vadd.f32 %v142_v21, %v124_v22  ;;  %v123_v24 = vld [vmem:[#allocation2] sm:$0xff] }
  0xf3   :  { %v132_v25 = vadd.f32 %v142_v21, %v123_v24 }
  0xf4   :  { %135 = vst.msk [vmem:[%s260_s3 + $0x8] sm:$0xff] %vm18_vm0, %v133_v23 }
  0xf5   :  { %134 = vst.msk [vmem:[%s260_s3] sm:$0xff] %vm18_vm0, %v132_v25 }

// kernel: bert_encoder_forward.34
= control target key start
LH: loop header
LB: loop body
LE: loop exit
PB: predicated region body
PF: predicated region fallthrough
CT: control target
= control target key end

     0   :  { %vm15_vm0 = vcmask 254976   ;;  %s90_s0 = inlined_call_operand.vmem [shape: f32[2,32], index: 0, kind: input, shape index: {}]   ;;  %s91_s1 = inlined_call_operand.vmem [shape: f32[1,32], index: 1, kind: input, shape index: {}]   ;;  %s92_s2 = inlined_call_operand.vmem [shape: f32[1,32], index: 2, kind: input, shape index: {}]   ;;  %s93_s3 = inlined_call_operand.vmem [shape: f32[2,32], index: 3, kind: output, shape index: {}]  }
   0x1   :  { %v14_v0 = vld [vmem:[%s90_s0] sm:$0x3] }
   0x2   :  { %v16_v1 = vsel %vm15_vm0, %v14_v0, 0.0  ;;  %v51_v11 = vld [vmem:[%s91_s1] ss:$0 sm:$0xff] }
   0x3   :  { %17 = vadd.xlane.f32.xlu0 %v16_v1  ;;  %v52_v13 = vld [vmem:[%s92_s2] ss:$0 sm:$0xff] }
  0x90   :  { %v18_v2 = vpop.xlane.xlu0 %17 }
  0x91   :  { %v20_v3 = vmul.f32 0.03125, %v18_v2 }
  0x93   :  { %v21_v4 = vsub.f32 %v14_v0, %v20_v3 }
  0x95   :  { %v22_v5 = vmul.f32 %v21_v4, %v21_v4 }
  0x97   :  { %v23_v6 = vsel %vm15_vm0, %v22_v5, 0.0 }
  0x98   :  { %24 = vadd.xlane.f32.xlu0 %v23_v6 }
 0x125   :  { %v25_v7 = vpop.xlane.xlu0 %24 }
 0x126   :  { %v26_v8 = vmul.f32 0.03125, %v25_v7 }
 0x128   :  { %v27_v9 = vadd.f32 1e-12, %v26_v8 }
 0x12a   :  { %53 = vrsqrt.f32 %v27_v9 }
 0x134   :  { %v54_v10 = vpop.eup %53 }
 0x135   :  { %v29_v12 = vmul.f32 %v54_v10, %v21_v4 }
 0x137   :  { %v37_v14 = vmul.f32 %v51_v11, %v29_v12 }
 0x139   :  { %v45_v15 = vadd.f32 %v52_v13, %v37_v14 }
 0x13b   :  { %46 = vst.msk [vmem:[%s93_s3] sm:$0x3] %vm15_vm0, %v45_v15 }

// kernel: bert_encoder_forward.33
= control target key start
LH: loop header
LB: loop body
LE: loop exit
PB: predicated region body
PF: predicated region fallthrough
CT: control target
= control target key end

     0   :  { %vm18_vm0 = vcmask 254976   ;;  %v158_v0 = vmov 0.0|0.0   ;;  %v159_v4 = vmov 0.0   ;;  %vm160_vm1 = vmmov 0   ;;  %s205_s1 = inlined_call_operand.vmem [shape: f32[32,32], index: 1, kind: input, shape index: {}]   ;;  %s206_s0 = inlined_call_operand.vmem [shape: f32[2,32], index: 0, kind: input, shape index: {}]   ;;  %s207_s2 = inlined_call_operand.vmem [shape: f32[1,32], index: 2, kind: input, shape index: {}]   ;;  %s208_s3 = inlined_call_operand.vmem [shape: f32[2,32], index: 3, kind: output, shape index: {}]  }
   0x1   :  { %147 = vmatprep.subr.bf16.mxu0 %v158_v0  ;;  %v22_v1 = vld [vmem:[%s205_s1] sm:$0xff]  ;;  %v23_v2 = vld [vmem:[%s205_s1 + $0x8] sm:$0xff]  ;;  %v24_v3 = vld [vmem:[%s205_s1 + $0x10] sm:$0xff]  ;;  %19 = vst.msk [vmem:[#allocation2] sm:$0x3] %vm18_vm0, %v159_v4  ;;  %144 = vmatprep.mubr.msk.f32.mxu0 %vm160_vm1, %v159_v4  ;;  %vm26_vm2 = vcmask 261120  }
   0x2   :  { %v148_v5 = vpack.c.bf16 %v23_v2, %v22_v1  ;;  %v25_v6 = vld [vmem:[%s205_s1 + $0x18] sm:$0xff]  ;;  %v21_v8 = vld [vmem:[%s206_s0] sm:$0x3] }
   0x3   :  { %v151_v7 = vpack.c.bf16 %v25_v6, %v24_v3  ;;  %v130_v13 = vld [vmem:[%s207_s2] ss:$0 sm:$0xff] }
   0x4   :  { %149 = vmatpush3.bf16.msra.mxu0 %v148_v5 }
   0x5   :  { %150 = vmatprep.subr.bf16.mxu0 %v158_v0 }
   0x8   :  { %152 = vmatpush3.bf16.msra.mxu0 %v151_v7  ;;  %v20_v9 = vld [vmem:[#allocation2] sm:$0x3] }
   0xb   :  { %145 = vmatmul.mubr.msk.f32.vlgmr.msra.gmra.mrb[0].mxu0 %vm26_vm2, %v21_v8 }
  0xde   :  { %v96_v10 = vpop.f32.mrb[0].mxu0 }
  0xdf   :  { %v100_v11 = vadd.f32 %v96_v10, %v20_v9  ;;  %v146_v12 = vpop.f32.mrb[1].mxu0 }
  0xe1   :  { %102 = vst.msk [vmem:[#allocation2] sm:$0x3] %vm18_vm0, %v100_v11 }
  0xe8   :  { %v106_v14 = vld [vmem:[#allocation2] sm:$0x3] }
  0xe9   :  { %v114_v15 = vadd.f32 %v130_v13, %v106_v14 }
  0xeb   :  { %v115_v16 = vmul.f32 %v114_v15, %v114_v15 }
  0xed   :  { %v116_v17 = vmul.f32 %v115_v16, %v114_v15 }
  0xef   :  { %v117_v18 = vmul.f32 0.044715, %v116_v17 }
  0xf1   :  { %v118_v19 = vadd.f32 %v117_v18, %v114_v15 }
  0xf3   :  { %v119_v20 = vmul.f32 0.7978846, %v118_v19 }
  0xf5   :  { %156 = vtanh.f32 %v119_v20 }
  0xff   :  { %v157_v21 = vpop.eup %156 }
 0x100   :  { %v121_v22 = vadd.f32 1.0, %v157_v21 }
 0x102   :  { %v122_v23 = vmul.f32 0.5, %v121_v22 }
 0x104   :  { %v123_v24 = vmul.f32 %v122_v23, %v114_v15 }
 0x106   :  { %124 = vst.msk [vmem:[%s208_s3] sm:$0x3] %vm18_vm0, %v123_v24 }

// kernel: bert_encoder_forward.35
= control target key start
LH: loop header
LB: loop body
LE: loop exit
PB: predicated region body
PF: predicated region fallthrough
CT: control target
= control target key end

     0   :  { %v145_v0 = vmov 0.0|0.0   ;;  %v146_v4 = vmov 0.0   ;;  %vm147_vm0 = vmmov 0   ;;  %vm25_vm1 = vcmask 261120   ;;  %s189_s1 = inlined_call_operand.vmem [shape: f32[32,128], index: 1, kind: input, shape index: {}]   ;;  %s190_s0 = inlined_call_operand.vmem [shape: f32[2,32], index: 0, kind: input, shape index: {}]   ;;  %s191_s2 = inlined_call_operand.vmem [shape: f32[1,128], index: 2, kind: input, shape index: {}]   ;;  %s192_s3 = inlined_call_operand.vmem [shape: f32[2,128], index: 3, kind: output, shape index: {}]  }
   0x1   :  { %136 = vmatprep.subr.bf16.mxu0 %v145_v0  ;;  %v21_v1 = vld [vmem:[%s189_s1] sm:$0xff]  ;;  %v22_v2 = vld [vmem:[%s189_s1 + $0x8] sm:$0xff]  ;;  %v23_v3 = vld [vmem:[%s189_s1 + $0x10] sm:$0xff]  ;;  %18 = vst [vmem:[#allocation2] sm:$0x3] %v146_v4  ;;  %133 = vmatprep.mubr.msk.f32.mxu0 %vm147_vm0, %v146_v4 }
   0x2   :  { %v137_v5 = vpack.c.bf16 %v22_v2, %v21_v1  ;;  %v24_v6 = vld [vmem:[%s189_s1 + $0x18] sm:$0xff]  ;;  %v20_v8 = vld [vmem:[%s190_s0] sm:$0x3] }
   0x3   :  { %v140_v7 = vpack.c.bf16 %v24_v6, %v23_v3  ;;  %v119_v13 = vld [vmem:[%s191_s2] ss:$0 sm:$0xff] }
   0x4   :  { %138 = vmatpush3.bf16.msra.mxu0 %v137_v5 }
   0x5   :  { %139 = vmatprep.subr.bf16.mxu0 %v145_v0 }
   0x8   :  { %141 = vmatpush3.bf16.msra.mxu0 %v140_v7  ;;  %v19_v9 = vld [vmem:[#allocation2] sm:$0x3] }
   0xb   :  { %134 = vmatmul.mubr.msk.f32.vlgmr.msra.gmra.mrb[0].mxu0 %vm25_vm1, %v20_v8 }
  0xde   :  { %v95_v10 = vpop.f32.mrb[0].mxu0 }
  0xdf   :  { %v99_v11 = vadd.f32 %v95_v10, %v19_v9  ;;  %v135_v12 = vpop.f32.mrb[1].mxu0 }
  0xe1   :  { %100 = vst [vmem:[#allocation2] sm:$0x3] %v99_v11 }
  0xe8   :  { %v104_v14 = vld [vmem:[#allocation2] sm:$0x3] }
  0xe9   :  { %v112_v15 = vadd.f32 %v119_v13, %v104_v14 }
  0xeb   :  { %113 = vst [vmem:[%s192_s3] sm:$0x3] %v112_v15 }

</bundles_post_ra>
